<compile_context>
chip_gen: v6e
topology: v6e:2x2x1
jax: 0.10.0
libtpu: 0.0.40
codegen_flags: <defaults>
</compile_context>

<pallas_src>
import jax
import jax.numpy as jnp
from jax import lax
from jax.experimental import pallas as pl
from jax.experimental.pallas import tpu as pltpu

LANE = 128  # pad feature dims to full vreg lane width


def _round_up(n, m):
    return ((n + m - 1) // m) * m


def _gated_seq_kernel(xproj_ref, s0_ref, w1s_ref, w2s_ref, b2s_ref,
                      h_ref, sfin_ref):
    """Whole recurrence in one kernel invocation; state carried in vregs."""
    T, B, _ = xproj_ref.shape
    SP = s0_ref.shape[1]

    # Weights are VMEM-resident; read once before the unrolled loop.
    w1s = w1s_ref[...]                                   # (SP, HP)
    w2s = w2s_ref[...]                                   # (HP, SP)
    # Hoist the bias broadcast out of the loop (JAX doesn't CSE broadcast_in_dim).
    b2s = jnp.broadcast_to(b2s_ref[...], (B, SP))        # (B, SP)

    def step(t, s):
        # Dense layer 1: x @ W1x + b1 was hoisted outside the kernel into xproj;
        # only the sequentially-dependent term s @ W1s runs inside the recurrence.
        h = jnp.maximum(
            jnp.dot(s, w1s, preferred_element_type=jnp.float32) + xproj_ref[t],
            0.0)                                         # (B, HP), ReLU
        h_ref[t] = h                                     # lane-dense (B, 128) store
        # Dense layer 2, state half only (output half hoisted outside).
        return jnp.tanh(
            jnp.dot(h, w2s, preferred_element_type=jnp.float32) + b2s)

    s_final = lax.fori_loop(0, T, step, s0_ref[...], unroll=True)
    sfin_ref[...] = s_final                              # single store at the end


@jax.jit
def gated_state_sequence(xs, state0, padded_params):
    """Run T recurrent steps with one pallas_call.

    xs: (T, B, input_size), state0: (B, state_size)
    returns (outputs (T,B,output), final_state (B,state), prev_state (B,state)).
    """
    w1x_p, w1s_p, b1_p, w2s_p, b2s_p, w2o_p, b2o = padded_params
    T, B, input_size = xs.shape
    state_size = state0.shape[1]
    HP = w1x_p.shape[1]
    SP = w1s_p.shape[0]
    output_size = w2o_p.shape[1]

    # Hoisted input projection: one big MXU-efficient matmul over all T*B rows.
    xproj = (xs.reshape(T * B, input_size) @ w1x_p + b1_p).reshape(T, B, HP)

    # Zero-pad the initial state to SP lanes (padded lanes stay exactly zero).
    s0 = jnp.zeros((B, SP), jnp.float32).at[:, :state_size].set(state0)

    vmem = pltpu.MemorySpace.VMEM
    h_slab, s_final_p = pl.pallas_call(
        _gated_seq_kernel,
        out_shape=(
            jax.ShapeDtypeStruct((T, B, HP), jnp.float32),   # h slab
            jax.ShapeDtypeStruct((B, SP), jnp.float32),      # final state (padded)
        ),
        in_specs=[pl.BlockSpec(memory_space=vmem)] * 5,
        out_specs=(pl.BlockSpec(memory_space=vmem),
                   pl.BlockSpec(memory_space=vmem)),
    )(xproj, s0, w1s_p, w2s_p, b2s_p)

    # Output half of Dense layer 2: no sequential dependence -> one batched matmul.
    outputs = (h_slab.reshape(T * B, HP) @ w2o_p + b2o).reshape(T, B, output_size)

    # State *before* the final step (last_state bookkeeping), computed once.
    if T > 1:
        prev_state = jnp.tanh(h_slab[T - 2] @ w2s_p + b2s_p)[:, :state_size]
    else:
        prev_state = state0

    return outputs, s_final_p[:, :state_size], prev_state


def _ref_forward_sequence(xs, state0, params):
    """Pure-JAX reference of the same recurrence (for correctness check)."""
    w1x, w1s, b1, w2, b2 = params
    state_size = state0.shape[1]

    def step(s, x):
        h = jnp.maximum(x @ w1x + s @ w1s + b1, 0.0)
        v = h @ w2 + b2
        new_s = jnp.tanh(v[:, :state_size])
        return new_s, v[:, state_size:]

    final_s, outs = jax.lax.scan(step, state0, xs)
    return outs, final_s


class GatedStateLayer:
    """JAX/Pallas port of the PyTorch GatedStateLayer (stateful wrapper)."""

    def __init__(self, batch_size, input_size, output_size, state_size, key):
        self.input_size = input_size
        self.output_size = output_size
        self.state_size = state_size
        self.batch_size = batch_size

        in1 = input_size + state_size          # Dense layer-1 fan-in
        hidden = state_size + output_size      # Dense layer widths
        k1, k2, k3, k4 = jax.random.split(key, 4)

        # PyTorch nn.Linear default init: U(-1/sqrt(fan_in), 1/sqrt(fan_in)).
        lim1 = 1.0 / jnp.sqrt(jnp.float32(in1))
        lim2 = 1.0 / jnp.sqrt(jnp.float32(hidden))
        w1 = jax.random.uniform(k1, (in1, hidden), jnp.float32, -lim1, lim1)
        b1 = jax.random.uniform(k2, (1, hidden), jnp.float32, -lim1, lim1)
        w2 = jax.random.uniform(k3, (hidden, hidden), jnp.float32, -lim2, lim2)
        b2 = jax.random.uniform(k4, (1, hidden), jnp.float32, -lim2, lim2)

        # Logical (unpadded) params: W1 rows pre-split by [x | state].
        self.params = (
            w1[:input_size, :],                # w1x: (input_size, hidden)
            w1[input_size:, :],                # w1s: (state_size, hidden)
            b1,                                # b1 : (1, hidden)
            w2,                                # w2 : (hidden, hidden)
            b2,                                # b2 : (1, hidden)
        )

        # Lane-dense padded params for the kernel (hidden/state -> 128 lanes).
        HP = _round_up(hidden, LANE)
        SP = _round_up(state_size, LANE)
        w1x_p = jnp.zeros((input_size, HP), jnp.float32).at[:, :hidden].set(w1[:input_size, :])
        w1s_p = jnp.zeros((SP, HP), jnp.float32).at[:state_size, :hidden].set(w1[input_size:, :])
        b1_p = jnp.zeros((1, HP), jnp.float32).at[:, :hidden].set(b1)
        w2s_p = jnp.zeros((HP, SP), jnp.float32).at[:hidden, :state_size].set(w2[:, :state_size])
        b2s_p = jnp.zeros((1, SP), jnp.float32).at[:, :state_size].set(b2[:, :state_size])
        w2o_p = jnp.zeros((HP, output_size), jnp.float32).at[:hidden, :].set(w2[:, state_size:])
        b2o = b2[:, state_size:]
        self.padded_params = (w1x_p, w1s_p, b1_p, w2s_p, b2s_p, w2o_p, b2o)

        self.state = jnp.zeros((batch_size, state_size), jnp.float32)
        self.last_state = self.state

    def forward(self, x0):
        """Single recurrent step (PyTorch-equivalent signature)."""
        outputs, final_state, _ = gated_state_sequence(
            x0[None], self.state, self.padded_params)
        self.last_state = self.state
        self.state = final_state
        return outputs[0]

    def forward_sequence(self, xs):
        """Fused multi-step forward: one pallas_call for all T steps."""
        outputs, final_state, prev_state = gated_state_sequence(
            xs, self.state, self.padded_params)
        self.last_state = prev_state
        self.state = final_state
        return outputs

    def reset(self):
        self.state = jnp.zeros((self.batch_size, self.state_size), jnp.float32)


if __name__ == "__main__":
    key = jax.random.PRNGKey(0)
    k_params, k_x = jax.random.split(key)

    batch_size, input_size, output_size, state_size, T = 8, 16, 16, 24, 12
    layer = GatedStateLayer(batch_size, input_size, output_size, state_size, k_params)

    xs = jax.random.normal(k_x, (T, batch_size, input_size), jnp.float32)

    # Fused T-step recurrence (single pallas_call, unrolled in-kernel loop).
    outs = layer.forward_sequence(xs)
    outs = jax.block_until_ready(outs)
    final_state = jax.block_until_ready(layer.state)

    assert outs.shape == (T, batch_size, output_size)
    assert final_state.shape == (batch_size, state_size)

    # Pure-JAX reference of the same recurrence from the same zero initial state.
    ref_outs, ref_final = _ref_forward_sequence(
        xs, jnp.zeros((batch_size, state_size), jnp.float32), layer.params)
    assert jnp.allclose(outs, ref_outs, atol=1e-3, rtol=1e-3)
    assert jnp.allclose(final_state, ref_final, atol=1e-3, rtol=1e-3)

    # Also exercise the single-step path (T=1 fused call, carried state).
    out_step = layer.forward(xs[0])
    out_step = jax.block_until_ready(out_step)
    assert out_step.shape == (batch_size, output_size)
    ref_out1, _ = _ref_forward_sequence(xs[0][None], ref_final, layer.params)
    assert jnp.allclose(out_step, ref_out1[0], atol=1e-3, rtol=1e-3)

    print("KERNEL_OK")
</pallas_src>

<mosaic_0001>
module attributes {stable_mosaic.version = 11 : i64} {
  func.func @_gated_seq_kernel(%arg0: memref<12x8x128xf32, #tpu.memory_space<vmem>>, %arg1: memref<8x128xf32, #tpu.memory_space<vmem>>, %arg2: memref<128x128xf32, #tpu.memory_space<vmem>>, %arg3: memref<128x128xf32, #tpu.memory_space<vmem>>, %arg4: memref<1x128xf32, #tpu.memory_space<vmem>>, %arg5: memref<12x8x128xf32, #tpu.memory_space<vmem>>, %arg6: memref<8x128xf32, #tpu.memory_space<vmem>>) attributes {dimension_semantics = [], scalar_prefetch = 0 : i64, scratch_operands = 0 : i64, tpu.core_type = #tpu.core_type<tc>} {
    %c0 = arith.constant 0 : index
    %c0_0 = arith.constant 0 : index
    %0 = vector.load %arg2[%c0, %c0_0] : memref<128x128xf32, #tpu.memory_space<vmem>>, vector<128x128xf32>
    %c0_1 = arith.constant 0 : index
    %c0_2 = arith.constant 0 : index
    %1 = vector.load %arg3[%c0_1, %c0_2] : memref<128x128xf32, #tpu.memory_space<vmem>>, vector<128x128xf32>
    %c0_3 = arith.constant 0 : index
    %c0_4 = arith.constant 0 : index
    %2 = vector.load %arg4[%c0_3, %c0_4] : memref<1x128xf32, #tpu.memory_space<vmem>>, vector<1x128xf32>
    %3 = vector.shape_cast %2 : vector<1x128xf32> to vector<1x128xf32>
    %4 = vector.broadcast %3 : vector<1x128xf32> to vector<8x128xf32>
    %c0_5 = arith.constant 0 : index
    %c0_6 = arith.constant 0 : index
    %5 = vector.load %arg1[%c0_5, %c0_6] : memref<8x128xf32, #tpu.memory_space<vmem>>, vector<8x128xf32>
    %c0_i32 = arith.constant 0 : i32
    %cst = arith.constant dense<0.000000e+00> : vector<8x128xf32>
    %6 = tpu.matmul %5, %0, %cst {dimension_numbers = #tpu.dot_dimension_numbers<[1], [0], [0], [1], [0, 0, 1, 1], [], []>} : vector<8x128xf32>, vector<128x128xf32>, vector<8x128xf32> -> vector<8x128xf32>
    %7 = arith.index_cast %c0_i32 : i32 to index
    %c0_7 = arith.constant 0 : index
    %c0_8 = arith.constant 0 : index
    %8 = vector.load %arg0[%7, %c0_7, %c0_8] : memref<12x8x128xf32, #tpu.memory_space<vmem>>, vector<1x8x128xf32>
    %9 = vector.shape_cast %8 : vector<1x8x128xf32> to vector<8x128xf32>
    %10 = arith.addf %6, %9 : vector<8x128xf32>
    %cst_9 = arith.constant 0.000000e+00 : f32
    %11 = vector.broadcast %cst_9 : f32 to vector<8x128xf32>
    %12 = arith.maximumf %10, %11 : vector<8x128xf32>
    %13 = arith.index_cast %c0_i32 : i32 to index
    %c0_10 = arith.constant 0 : index
    %c0_11 = arith.constant 0 : index
    %14 = vector.load %arg5[%13, %c0_10, %c0_11] : memref<12x8x128xf32, #tpu.memory_space<vmem>>, vector<1x8x128xf32>
    %15 = vector.shape_cast %14 : vector<1x8x128xf32> to vector<8x128xf32>
    %16 = vector.shape_cast %12 : vector<8x128xf32> to vector<1x8x128xf32>
    tpu.vector_store %arg5[%13, %c0_10, %c0_11], %16 {strides = array<i32>} : memref<12x8x128xf32, #tpu.memory_space<vmem>>, vector<1x8x128xf32>,
    %cst_12 = arith.constant dense<0.000000e+00> : vector<8x128xf32>
    %17 = tpu.matmul %12, %1, %cst_12 {dimension_numbers = #tpu.dot_dimension_numbers<[1], [0], [0], [1], [0, 0, 1, 1], [], []>} : vector<8x128xf32>, vector<128x128xf32>, vector<8x128xf32> -> vector<8x128xf32>
    %18 = arith.addf %17, %4 : vector<8x128xf32>
    %19 = math.tanh %18 : vector<8x128xf32>
    %c1_i32 = arith.constant 1 : i32
    %cst_13 = arith.constant dense<0.000000e+00> : vector<8x128xf32>
    %20 = tpu.matmul %19, %0, %cst_13 {dimension_numbers = #tpu.dot_dimension_numbers<[1], [0], [0], [1], [0, 0, 1, 1], [], []>} : vector<8x128xf32>, vector<128x128xf32>, vector<8x128xf32> -> vector<8x128xf32>
    %21 = arith.index_cast %c1_i32 : i32 to index
    %c0_14 = arith.constant 0 : index
    %c0_15 = arith.constant 0 : index
    %22 = vector.load %arg0[%21, %c0_14, %c0_15] : memref<12x8x128xf32, #tpu.memory_space<vmem>>, vector<1x8x128xf32>
    %23 = vector.shape_cast %22 : vector<1x8x128xf32> to vector<8x128xf32>
    %24 = arith.addf %20, %23 : vector<8x128xf32>
    %cst_16 = arith.constant 0.000000e+00 : f32
    %25 = vector.broadcast %cst_16 : f32 to vector<8x128xf32>
    %26 = arith.maximumf %24, %25 : vector<8x128xf32>
    %27 = arith.index_cast %c1_i32 : i32 to index
    %c0_17 = arith.constant 0 : index
    %c0_18 = arith.constant 0 : index
    %28 = vector.load %arg5[%27, %c0_17, %c0_18] : memref<12x8x128xf32, #tpu.memory_space<vmem>>, vector<1x8x128xf32>
    %29 = vector.shape_cast %28 : vector<1x8x128xf32> to vector<8x128xf32>
    %30 = vector.shape_cast %26 : vector<8x128xf32> to vector<1x8x128xf32>
    tpu.vector_store %arg5[%27, %c0_17, %c0_18], %30 {strides = array<i32>} : memref<12x8x128xf32, #tpu.memory_space<vmem>>, vector<1x8x128xf32>,
    %cst_19 = arith.constant dense<0.000000e+00> : vector<8x128xf32>
    %31 = tpu.matmul %26, %1, %cst_19 {dimension_numbers = #tpu.dot_dimension_numbers<[1], [0], [0], [1], [0, 0, 1, 1], [], []>} : vector<8x128xf32>, vector<128x128xf32>, vector<8x128xf32> -> vector<8x128xf32>
    %32 = arith.addf %31, %4 : vector<8x128xf32>
    %33 = math.tanh %32 : vector<8x128xf32>
    %c2_i32 = arith.constant 2 : i32
    %cst_20 = arith.constant dense<0.000000e+00> : vector<8x128xf32>
    %34 = tpu.matmul %33, %0, %cst_20 {dimension_numbers = #tpu.dot_dimension_numbers<[1], [0], [0], [1], [0, 0, 1, 1], [], []>} : vector<8x128xf32>, vector<128x128xf32>, vector<8x128xf32> -> vector<8x128xf32>
    %35 = arith.index_cast %c2_i32 : i32 to index
    %c0_21 = arith.constant 0 : index
    %c0_22 = arith.constant 0 : index
    %36 = vector.load %arg0[%35, %c0_21, %c0_22] : memref<12x8x128xf32, #tpu.memory_space<vmem>>, vector<1x8x128xf32>
    %37 = vector.shape_cast %36 : vector<1x8x128xf32> to vector<8x128xf32>
    %38 = arith.addf %34, %37 : vector<8x128xf32>
    %cst_23 = arith.constant 0.000000e+00 : f32
    %39 = vector.broadcast %cst_23 : f32 to vector<8x128xf32>
    %40 = arith.maximumf %38, %39 : vector<8x128xf32>
    %41 = arith.index_cast %c2_i32 : i32 to index
    %c0_24 = arith.constant 0 : index
    %c0_25 = arith.constant 0 : index
    %42 = vector.load %arg5[%41, %c0_24, %c0_25] : memref<12x8x128xf32, #tpu.memory_space<vmem>>, vector<1x8x128xf32>
    %43 = vector.shape_cast %42 : vector<1x8x128xf32> to vector<8x128xf32>
    %44 = vector.shape_cast %40 : vector<8x128xf32> to vector<1x8x128xf32>
    tpu.vector_store %arg5[%41, %c0_24, %c0_25], %44 {strides = array<i32>} : memref<12x8x128xf32, #tpu.memory_space<vmem>>, vector<1x8x128xf32>,
    %cst_26 = arith.constant dense<0.000000e+00> : vector<8x128xf32>
    %45 = tpu.matmul %40, %1, %cst_26 {dimension_numbers = #tpu.dot_dimension_numbers<[1], [0], [0], [1], [0, 0, 1, 1], [], []>} : vector<8x128xf32>, vector<128x128xf32>, vector<8x128xf32> -> vector<8x128xf32>
    %46 = arith.addf %45, %4 : vector<8x128xf32>
    %47 = math.tanh %46 : vector<8x128xf32>
    %c3_i32 = arith.constant 3 : i32
    %cst_27 = arith.constant dense<0.000000e+00> : vector<8x128xf32>
    %48 = tpu.matmul %47, %0, %cst_27 {dimension_numbers = #tpu.dot_dimension_numbers<[1], [0], [0], [1], [0, 0, 1, 1], [], []>} : vector<8x128xf32>, vector<128x128xf32>, vector<8x128xf32> -> vector<8x128xf32>
    %49 = arith.index_cast %c3_i32 : i32 to index
    %c0_28 = arith.constant 0 : index
    %c0_29 = arith.constant 0 : index
    %50 = vector.load %arg0[%49, %c0_28, %c0_29] : memref<12x8x128xf32, #tpu.memory_space<vmem>>, vector<1x8x128xf32>
    %51 = vector.shape_cast %50 : vector<1x8x128xf32> to vector<8x128xf32>
    %52 = arith.addf %48, %51 : vector<8x128xf32>
    %cst_30 = arith.constant 0.000000e+00 : f32
    %53 = vector.broadcast %cst_30 : f32 to vector<8x128xf32>
    %54 = arith.maximumf %52, %53 : vector<8x128xf32>
    %55 = arith.index_cast %c3_i32 : i32 to index
    %c0_31 = arith.constant 0 : index
    %c0_32 = arith.constant 0 : index
    %56 = vector.load %arg5[%55, %c0_31, %c0_32] : memref<12x8x128xf32, #tpu.memory_space<vmem>>, vector<1x8x128xf32>
    %57 = vector.shape_cast %56 : vector<1x8x128xf32> to vector<8x128xf32>
    %58 = vector.shape_cast %54 : vector<8x128xf32> to vector<1x8x128xf32>
    tpu.vector_store %arg5[%55, %c0_31, %c0_32], %58 {strides = array<i32>} : memref<12x8x128xf32, #tpu.memory_space<vmem>>, vector<1x8x128xf32>,
    %cst_33 = arith.constant dense<0.000000e+00> : vector<8x128xf32>
    %59 = tpu.matmul %54, %1, %cst_33 {dimension_numbers = #tpu.dot_dimension_numbers<[1], [0], [0], [1], [0, 0, 1, 1], [], []>} : vector<8x128xf32>, vector<128x128xf32>, vector<8x128xf32> -> vector<8x128xf32>
    %60 = arith.addf %59, %4 : vector<8x128xf32>
    %61 = math.tanh %60 : vector<8x128xf32>
    %c4_i32 = arith.constant 4 : i32
    %cst_34 = arith.constant dense<0.000000e+00> : vector<8x128xf32>
    %62 = tpu.matmul %61, %0, %cst_34 {dimension_numbers = #tpu.dot_dimension_numbers<[1], [0], [0], [1], [0, 0, 1, 1], [], []>} : vector<8x128xf32>, vector<128x128xf32>, vector<8x128xf32> -> vector<8x128xf32>
    %63 = arith.index_cast %c4_i32 : i32 to index
    %c0_35 = arith.constant 0 : index
    %c0_36 = arith.constant 0 : index
    %64 = vector.load %arg0[%63, %c0_35, %c0_36] : memref<12x8x128xf32, #tpu.memory_space<vmem>>, vector<1x8x128xf32>
    %65 = vector.shape_cast %64 : vector<1x8x128xf32> to vector<8x128xf32>
    %66 = arith.addf %62, %65 : vector<8x128xf32>
    %cst_37 = arith.constant 0.000000e+00 : f32
    %67 = vector.broadcast %cst_37 : f32 to vector<8x128xf32>
    %68 = arith.maximumf %66, %67 : vector<8x128xf32>
    %69 = arith.index_cast %c4_i32 : i32 to index
    %c0_38 = arith.constant 0 : index
    %c0_39 = arith.constant 0 : index
    %70 = vector.load %arg5[%69, %c0_38, %c0_39] : memref<12x8x128xf32, #tpu.memory_space<vmem>>, vector<1x8x128xf32>
    %71 = vector.shape_cast %70 : vector<1x8x128xf32> to vector<8x128xf32>
    %72 = vector.shape_cast %68 : vector<8x128xf32> to vector<1x8x128xf32>
    tpu.vector_store %arg5[%69, %c0_38, %c0_39], %72 {strides = array<i32>} : memref<12x8x128xf32, #tpu.memory_space<vmem>>, vector<1x8x128xf32>,
    %cst_40 = arith.constant dense<0.000000e+00> : vector<8x128xf32>
    %73 = tpu.matmul %68, %1, %cst_40 {dimension_numbers = #tpu.dot_dimension_numbers<[1], [0], [0], [1], [0, 0, 1, 1], [], []>} : vector<8x128xf32>, vector<128x128xf32>, vector<8x128xf32> -> vector<8x128xf32>
    %74 = arith.addf %73, %4 : vector<8x128xf32>
    %75 = math.tanh %74 : vector<8x128xf32>
    %c5_i32 = arith.constant 5 : i32
    %cst_41 = arith.constant dense<0.000000e+00> : vector<8x128xf32>
    %76 = tpu.matmul %75, %0, %cst_41 {dimension_numbers = #tpu.dot_dimension_numbers<[1], [0], [0], [1], [0, 0, 1, 1], [], []>} : vector<8x128xf32>, vector<128x128xf32>, vector<8x128xf32> -> vector<8x128xf32>
    %77 = arith.index_cast %c5_i32 : i32 to index
    %c0_42 = arith.constant 0 : index
    %c0_43 = arith.constant 0 : index
    %78 = vector.load %arg0[%77, %c0_42, %c0_43] : memref<12x8x128xf32, #tpu.memory_space<vmem>>, vector<1x8x128xf32>
    %79 = vector.shape_cast %78 : vector<1x8x128xf32> to vector<8x128xf32>
    %80 = arith.addf %76, %79 : vector<8x128xf32>
    %cst_44 = arith.constant 0.000000e+00 : f32
    %81 = vector.broadcast %cst_44 : f32 to vector<8x128xf32>
    %82 = arith.maximumf %80, %81 : vector<8x128xf32>
    %83 = arith.index_cast %c5_i32 : i32 to index
    %c0_45 = arith.constant 0 : index
    %c0_46 = arith.constant 0 : index
    %84 = vector.load %arg5[%83, %c0_45, %c0_46] : memref<12x8x128xf32, #tpu.memory_space<vmem>>, vector<1x8x128xf32>
    %85 = vector.shape_cast %84 : vector<1x8x128xf32> to vector<8x128xf32>
    %86 = vector.shape_cast %82 : vector<8x128xf32> to vector<1x8x128xf32>
    tpu.vector_store %arg5[%83, %c0_45, %c0_46], %86 {strides = array<i32>} : memref<12x8x128xf32, #tpu.memory_space<vmem>>, vector<1x8x128xf32>,
    %cst_47 = arith.constant dense<0.000000e+00> : vector<8x128xf32>
    %87 = tpu.matmul %82, %1, %cst_47 {dimension_numbers = #tpu.dot_dimension_numbers<[1], [0], [0], [1], [0, 0, 1, 1], [], []>} : vector<8x128xf32>, vector<128x128xf32>, vector<8x128xf32> -> vector<8x128xf32>
    %88 = arith.addf %87, %4 : vector<8x128xf32>
    %89 = math.tanh %88 : vector<8x128xf32>
    %c6_i32 = arith.constant 6 : i32
    %cst_48 = arith.constant dense<0.000000e+00> : vector<8x128xf32>
    %90 = tpu.matmul %89, %0, %cst_48 {dimension_numbers = #tpu.dot_dimension_numbers<[1], [0], [0], [1], [0, 0, 1, 1], [], []>} : vector<8x128xf32>, vector<128x128xf32>, vector<8x128xf32> -> vector<8x128xf32>
    %91 = arith.index_cast %c6_i32 : i32 to index
    %c0_49 = arith.constant 0 : index
    %c0_50 = arith.constant 0 : index
    %92 = vector.load %arg0[%91, %c0_49, %c0_50] : memref<12x8x128xf32, #tpu.memory_space<vmem>>, vector<1x8x128xf32>
    %93 = vector.shape_cast %92 : vector<1x8x128xf32> to vector<8x128xf32>
    %94 = arith.addf %90, %93 : vector<8x128xf32>
    %cst_51 = arith.constant 0.000000e+00 : f32
    %95 = vector.broadcast %cst_51 : f32 to vector<8x128xf32>
    %96 = arith.maximumf %94, %95 : vector<8x128xf32>
    %97 = arith.index_cast %c6_i32 : i32 to index
    %c0_52 = arith.constant 0 : index
    %c0_53 = arith.constant 0 : index
    %98 = vector.load %arg5[%97, %c0_52, %c0_53] : memref<12x8x128xf32, #tpu.memory_space<vmem>>, vector<1x8x128xf32>
    %99 = vector.shape_cast %98 : vector<1x8x128xf32> to vector<8x128xf32>
    %100 = vector.shape_cast %96 : vector<8x128xf32> to vector<1x8x128xf32>
    tpu.vector_store %arg5[%97, %c0_52, %c0_53], %100 {strides = array<i32>} : memref<12x8x128xf32, #tpu.memory_space<vmem>>, vector<1x8x128xf32>,
    %cst_54 = arith.constant dense<0.000000e+00> : vector<8x128xf32>
    %101 = tpu.matmul %96, %1, %cst_54 {dimension_numbers = #tpu.dot_dimension_numbers<[1], [0], [0], [1], [0, 0, 1, 1], [], []>} : vector<8x128xf32>, vector<128x128xf32>, vector<8x128xf32> -> vector<8x128xf32>
    %102 = arith.addf %101, %4 : vector<8x128xf32>
    %103 = math.tanh %102 : vector<8x128xf32>
    %c7_i32 = arith.constant 7 : i32
    %cst_55 = arith.constant dense<0.000000e+00> : vector<8x128xf32>
    %104 = tpu.matmul %103, %0, %cst_55 {dimension_numbers = #tpu.dot_dimension_numbers<[1], [0], [0], [1], [0, 0, 1, 1], [], []>} : vector<8x128xf32>, vector<128x128xf32>, vector<8x128xf32> -> vector<8x128xf32>
    %105 = arith.index_cast %c7_i32 : i32 to index
    %c0_56 = arith.constant 0 : index
    %c0_57 = arith.constant 0 : index
    %106 = vector.load %arg0[%105, %c0_56, %c0_57] : memref<12x8x128xf32, #tpu.memory_space<vmem>>, vector<1x8x128xf32>
    %107 = vector.shape_cast %106 : vector<1x8x128xf32> to vector<8x128xf32>
    %108 = arith.addf %104, %107 : vector<8x128xf32>
    %cst_58 = arith.constant 0.000000e+00 : f32
    %109 = vector.broadcast %cst_58 : f32 to vector<8x128xf32>
    %110 = arith.maximumf %108, %109 : vector<8x128xf32>
    %111 = arith.index_cast %c7_i32 : i32 to index
    %c0_59 = arith.constant 0 : index
    %c0_60 = arith.constant 0 : index
    %112 = vector.load %arg5[%111, %c0_59, %c0_60] : memref<12x8x128xf32, #tpu.memory_space<vmem>>, vector<1x8x128xf32>
    %113 = vector.shape_cast %112 : vector<1x8x128xf32> to vector<8x128xf32>
    %114 = vector.shape_cast %110 : vector<8x128xf32> to vector<1x8x128xf32>
    tpu.vector_store %arg5[%111, %c0_59, %c0_60], %114 {strides = array<i32>} : memref<12x8x128xf32, #tpu.memory_space<vmem>>, vector<1x8x128xf32>,
    %cst_61 = arith.constant dense<0.000000e+00> : vector<8x128xf32>
    %115 = tpu.matmul %110, %1, %cst_61 {dimension_numbers = #tpu.dot_dimension_numbers<[1], [0], [0], [1], [0, 0, 1, 1], [], []>} : vector<8x128xf32>, vector<128x128xf32>, vector<8x128xf32> -> vector<8x128xf32>
    %116 = arith.addf %115, %4 : vector<8x128xf32>
    %117 = math.tanh %116 : vector<8x128xf32>
    %c8_i32 = arith.constant 8 : i32
    %cst_62 = arith.constant dense<0.000000e+00> : vector<8x128xf32>
    %118 = tpu.matmul %117, %0, %cst_62 {dimension_numbers = #tpu.dot_dimension_numbers<[1], [0], [0], [1], [0, 0, 1, 1], [], []>} : vector<8x128xf32>, vector<128x128xf32>, vector<8x128xf32> -> vector<8x128xf32>
    %119 = arith.index_cast %c8_i32 : i32 to index
    %c0_63 = arith.constant 0 : index
    %c0_64 = arith.constant 0 : index
    %120 = vector.load %arg0[%119, %c0_63, %c0_64] : memref<12x8x128xf32, #tpu.memory_space<vmem>>, vector<1x8x128xf32>
    %121 = vector.shape_cast %120 : vector<1x8x128xf32> to vector<8x128xf32>
    %122 = arith.addf %118, %121 : vector<8x128xf32>
    %cst_65 = arith.constant 0.000000e+00 : f32
    %123 = vector.broadcast %cst_65 : f32 to vector<8x128xf32>
    %124 = arith.maximumf %122, %123 : vector<8x128xf32>
    %125 = arith.index_cast %c8_i32 : i32 to index
    %c0_66 = arith.constant 0 : index
    %c0_67 = arith.constant 0 : index
    %126 = vector.load %arg5[%125, %c0_66, %c0_67] : memref<12x8x128xf32, #tpu.memory_space<vmem>>, vector<1x8x128xf32>
    %127 = vector.shape_cast %126 : vector<1x8x128xf32> to vector<8x128xf32>
    %128 = vector.shape_cast %124 : vector<8x128xf32> to vector<1x8x128xf32>
    tpu.vector_store %arg5[%125, %c0_66, %c0_67], %128 {strides = array<i32>} : memref<12x8x128xf32, #tpu.memory_space<vmem>>, vector<1x8x128xf32>,
    %cst_68 = arith.constant dense<0.000000e+00> : vector<8x128xf32>
    %129 = tpu.matmul %124, %1, %cst_68 {dimension_numbers = #tpu.dot_dimension_numbers<[1], [0], [0], [1], [0, 0, 1, 1], [], []>} : vector<8x128xf32>, vector<128x128xf32>, vector<8x128xf32> -> vector<8x128xf32>
    %130 = arith.addf %129, %4 : vector<8x128xf32>
    %131 = math.tanh %130 : vector<8x128xf32>
    %c9_i32 = arith.constant 9 : i32
    %cst_69 = arith.constant dense<0.000000e+00> : vector<8x128xf32>
    %132 = tpu.matmul %131, %0, %cst_69 {dimension_numbers = #tpu.dot_dimension_numbers<[1], [0], [0], [1], [0, 0, 1, 1], [], []>} : vector<8x128xf32>, vector<128x128xf32>, vector<8x128xf32> -> vector<8x128xf32>
    %133 = arith.index_cast %c9_i32 : i32 to index
    %c0_70 = arith.constant 0 : index
    %c0_71 = arith.constant 0 : index
    %134 = vector.load %arg0[%133, %c0_70, %c0_71] : memref<12x8x128xf32, #tpu.memory_space<vmem>>, vector<1x8x128xf32>
    %135 = vector.shape_cast %134 : vector<1x8x128xf32> to vector<8x128xf32>
    %136 = arith.addf %132, %135 : vector<8x128xf32>
    %cst_72 = arith.constant 0.000000e+00 : f32
    %137 = vector.broadcast %cst_72 : f32 to vector<8x128xf32>
    %138 = arith.maximumf %136, %137 : vector<8x128xf32>
    %139 = arith.index_cast %c9_i32 : i32 to index
    %c0_73 = arith.constant 0 : index
    %c0_74 = arith.constant 0 : index
    %140 = vector.load %arg5[%139, %c0_73, %c0_74] : memref<12x8x128xf32, #tpu.memory_space<vmem>>, vector<1x8x128xf32>
    %141 = vector.shape_cast %140 : vector<1x8x128xf32> to vector<8x128xf32>
    %142 = vector.shape_cast %138 : vector<8x128xf32> to vector<1x8x128xf32>
    tpu.vector_store %arg5[%139, %c0_73, %c0_74], %142 {strides = array<i32>} : memref<12x8x128xf32, #tpu.memory_space<vmem>>, vector<1x8x128xf32>,
    %cst_75 = arith.constant dense<0.000000e+00> : vector<8x128xf32>
    %143 = tpu.matmul %138, %1, %cst_75 {dimension_numbers = #tpu.dot_dimension_numbers<[1], [0], [0], [1], [0, 0, 1, 1], [], []>} : vector<8x128xf32>, vector<128x128xf32>, vector<8x128xf32> -> vector<8x128xf32>
    %144 = arith.addf %143, %4 : vector<8x128xf32>
    %145 = math.tanh %144 : vector<8x128xf32>
    %c10_i32 = arith.constant 10 : i32
    %cst_76 = arith.constant dense<0.000000e+00> : vector<8x128xf32>
    %146 = tpu.matmul %145, %0, %cst_76 {dimension_numbers = #tpu.dot_dimension_numbers<[1], [0], [0], [1], [0, 0, 1, 1], [], []>} : vector<8x128xf32>, vector<128x128xf32>, vector<8x128xf32> -> vector<8x128xf32>
    %147 = arith.index_cast %c10_i32 : i32 to index
    %c0_77 = arith.constant 0 : index
    %c0_78 = arith.constant 0 : index
    %148 = vector.load %arg0[%147, %c0_77, %c0_78] : memref<12x8x128xf32, #tpu.memory_space<vmem>>, vector<1x8x128xf32>
    %149 = vector.shape_cast %148 : vector<1x8x128xf32> to vector<8x128xf32>
    %150 = arith.addf %146, %149 : vector<8x128xf32>
    %cst_79 = arith.constant 0.000000e+00 : f32
    %151 = vector.broadcast %cst_79 : f32 to vector<8x128xf32>
    %152 = arith.maximumf %150, %151 : vector<8x128xf32>
    %153 = arith.index_cast %c10_i32 : i32 to index
    %c0_80 = arith.constant 0 : index
    %c0_81 = arith.constant 0 : index
    %154 = vector.load %arg5[%153, %c0_80, %c0_81] : memref<12x8x128xf32, #tpu.memory_space<vmem>>, vector<1x8x128xf32>
    %155 = vector.shape_cast %154 : vector<1x8x128xf32> to vector<8x128xf32>
    %156 = vector.shape_cast %152 : vector<8x128xf32> to vector<1x8x128xf32>
    tpu.vector_store %arg5[%153, %c0_80, %c0_81], %156 {strides = array<i32>} : memref<12x8x128xf32, #tpu.memory_space<vmem>>, vector<1x8x128xf32>,
    %cst_82 = arith.constant dense<0.000000e+00> : vector<8x128xf32>
    %157 = tpu.matmul %152, %1, %cst_82 {dimension_numbers = #tpu.dot_dimension_numbers<[1], [0], [0], [1], [0, 0, 1, 1], [], []>} : vector<8x128xf32>, vector<128x128xf32>, vector<8x128xf32> -> vector<8x128xf32>
    %158 = arith.addf %157, %4 : vector<8x128xf32>
    %159 = math.tanh %158 : vector<8x128xf32>
    %c11_i32 = arith.constant 11 : i32
    %cst_83 = arith.constant dense<0.000000e+00> : vector<8x128xf32>
    %160 = tpu.matmul %159, %0, %cst_83 {dimension_numbers = #tpu.dot_dimension_numbers<[1], [0], [0], [1], [0, 0, 1, 1], [], []>} : vector<8x128xf32>, vector<128x128xf32>, vector<8x128xf32> -> vector<8x128xf32>
    %161 = arith.index_cast %c11_i32 : i32 to index
    %c0_84 = arith.constant 0 : index
    %c0_85 = arith.constant 0 : index
    %162 = vector.load %arg0[%161, %c0_84, %c0_85] : memref<12x8x128xf32, #tpu.memory_space<vmem>>, vector<1x8x128xf32>
    %163 = vector.shape_cast %162 : vector<1x8x128xf32> to vector<8x128xf32>
    %164 = arith.addf %160, %163 : vector<8x128xf32>
    %cst_86 = arith.constant 0.000000e+00 : f32
    %165 = vector.broadcast %cst_86 : f32 to vector<8x128xf32>
    %166 = arith.maximumf %164, %165 : vector<8x128xf32>
    %167 = arith.index_cast %c11_i32 : i32 to index
    %c0_87 = arith.constant 0 : index
    %c0_88 = arith.constant 0 : index
    %168 = vector.load %arg5[%167, %c0_87, %c0_88] : memref<12x8x128xf32, #tpu.memory_space<vmem>>, vector<1x8x128xf32>
    %169 = vector.shape_cast %168 : vector<1x8x128xf32> to vector<8x128xf32>
    %170 = vector.shape_cast %166 : vector<8x128xf32> to vector<1x8x128xf32>
    tpu.vector_store %arg5[%167, %c0_87, %c0_88], %170 {strides = array<i32>} : memref<12x8x128xf32, #tpu.memory_space<vmem>>, vector<1x8x128xf32>,
    %cst_89 = arith.constant dense<0.000000e+00> : vector<8x128xf32>
    %171 = tpu.matmul %166, %1, %cst_89 {dimension_numbers = #tpu.dot_dimension_numbers<[1], [0], [0], [1], [0, 0, 1, 1], [], []>} : vector<8x128xf32>, vector<128x128xf32>, vector<8x128xf32> -> vector<8x128xf32>
    %172 = arith.addf %171, %4 : vector<8x128xf32>
    %173 = math.tanh %172 : vector<8x128xf32>
    %c12_i32 = arith.constant 12 : i32
    %c0_90 = arith.constant 0 : index
    %c0_91 = arith.constant 0 : index
    %174 = vector.load %arg6[%c0_90, %c0_91] : memref<8x128xf32, #tpu.memory_space<vmem>>, vector<8x128xf32>
    tpu.vector_store %arg6[%c0_90, %c0_91], %173 {strides = array<i32>} : memref<8x128xf32, #tpu.memory_space<vmem>>, vector<8x128xf32>,
    return
  }
}

</mosaic_0001>

<bundles_post_ra>
// kernel: gated_state_sequence.1
= control target key start
LH: loop header
LB: loop body
LE: loop exit
PB: predicated region body
PF: predicated region fallthrough
CT: control target
= control target key end

     0   :  { %12 = vsyncpa [#allocation3], 0  ;;  %s4409_s0 = inlined_call_operand.vmem [shape: f32[12,8,128], index: 0, kind: input, shape index: {}]   ;;  %s4410_s1 = inlined_call_operand.vmem [shape: f32[8,128], index: 1, kind: input, shape index: {}]   ;;  %s4411_s2 = inlined_call_operand.hbm [shape: f32[128,128], index: 2, kind: input, shape index: {}]   ;;  %s4412_s3 = inlined_call_operand.vmem [shape: f32[128,128], index: 3, kind: input, shape index: {}]   ;;  %s4413_s4 = inlined_call_operand.vmem [shape: f32[1,128], index: 4, kind: input, shape index: {}]   ;;  %s4414_s5 = inlined_call_operand.vmem [shape: f32[12,8,128], index: 5, kind: output, shape index: {0}]   ;;  %s4415_s6 = inlined_call_operand.hbm [shape: f32[8,128], index: 6, kind: output, shape index: {1}]  }
   0x1   :  { %13 = vsyncpa [#allocation4], 0  ;;  %s3225_s21 = smov [#allocation2]  }
   0x2   :  { %s23_s22 = sshll.u32 %s3225_s21, 4  ;;  %s24_s22 = int_to_ptr.vmem [resolvable:$true] %s23_s22 }
   0x3   :  { %s3189_s23 = scalar_lea.vmem %s24_s22, 2048  ;;  %p3194_p1 = scmp.lt.s32.totalorder %s24_s22, %s24_s22 }
   0x4   :  { %p3190_p0 = scmp.ne.s32.totalorder %s24_s22, %s3189_s23  ;;  %p3195_p2 = scmp.lt.s32.totalorder %s3189_s23, %s3189_s23 }
   0x6   :  { %p3196_p3 = por %p3195_p2, %p3194_p1 }
   0x8   :  { %p3197_p4 = pnand %p3196_p3, %p3190_p0 }
   0xa   :  { %3200 = shalt.err (!%p3197_p4)
}
   0xb   :  { %s3226_s24 = smov 128   ;;  %s3227_s25 = smov 8  }
   0xc   :  { %29 = dma.hbm_to_vmem [thread:$0]  %s4411_s2, 2048, %s24_s22, [#allocation3], %s3226_s24, %s3226_s24, %s3227_s25  }
   0xd   :  { %3221 = dma.done.wait [#allocation3], 2048  }
   0xe   :  { %3222 = vsyncadd [#allocation3], 4294965248  ;;  %v3228_v0 = vmov 0.0   ;;  %vm3229_vm0 = vmmov 0   ;;  %v3275_v1 = vld [vmem:[#allocation2 + $0x78] sm:$0xff]  ;;  %v3277_v2 = vld [vmem:[#allocation2 + $0x70] sm:$0xff] }
   0xf   :  { %2278 = vmatprep.subr.mxu0 %v3228_v0  ;;  %2310 = vmatprep.mubr.msk.f32.mxu0 %vm3229_vm0, %v3228_v0  ;;  %v3281_v3 = vld [vmem:[#allocation2 + $0x68] sm:$0xff]  ;;  %v3285_v4 = vld [vmem:[#allocation2 + $0x60] sm:$0xff]  ;;  %v3291_v5 = vld [vmem:[%s4412_s3 + $0x78] sm:$0xff]  ;;  %s3230_s15 = smov [#allocation5]  }
  0x10   :  { %2313 = vmatprep.subr.mxu1 %v3228_v0  ;;  %2345 = vmatprep.mubr.msk.f32.mxu1 %vm3229_vm0, %v3228_v0  ;;  %v3294_v6 = vld [vmem:[#allocation2 + $0x58] sm:$0xff]  ;;  %v3300_v7 = vld [vmem:[%s4412_s3 + $0x70] sm:$0xff]  ;;  %v3307_v8 = vld [vmem:[%s4412_s3 + $0x68] sm:$0xff]  ;;  %s1836_s16 = sshll.u32 %s3230_s15, 4  ;;  %s1837_s16 = int_to_ptr.vmem [resolvable:$true] %s1836_s16 }
  0x11   :  { %2279 = vmatpush3.msra.mxu0 %v3275_v1  ;;  %2314 = vmatpush3.msra.mxu1 %v3291_v5  ;;  %v3310_v9 = vld [vmem:[#allocation2 + $0x50] sm:$0xff]  ;;  %v3318_v10 = vld [vmem:[%s4412_s3 + $0x60] sm:$0xff]  ;;  %v3321_v11 = vld [vmem:[#allocation2 + $0x48] sm:$0xff]  ;;  %p3206_p6 = scmp.lt.s32.totalorder %s1837_s16, %s1837_s16 }
  0x12   :  { %2280 = vmatprep.subr.mxu0 %v3228_v0  ;;  %2315 = vmatprep.subr.mxu1 %v3228_v0  ;;  %v3329_v12 = vld [vmem:[%s4412_s3 + $0x58] sm:$0xff]  ;;  %v3332_v13 = vld [vmem:[#allocation2 + $0x40] sm:$0xff]  ;;  %v3340_v14 = vld [vmem:[%s4412_s3 + $0x50] sm:$0xff] }
  0x13   :  { %2281 = vmatpush3.msra.mxu0 %v3277_v2  ;;  %2316 = vmatpush3.msra.mxu1 %v3300_v7  ;;  %v3343_v15 = vld [vmem:[#allocation2 + $0x38] sm:$0xff]  ;;  %v3351_v16 = vld [vmem:[%s4412_s3 + $0x48] sm:$0xff]  ;;  %v3354_v17 = vld [vmem:[#allocation2 + $0x30] sm:$0xff] }
  0x14   :  { %2282 = vmatprep.subr.mxu0 %v3228_v0  ;;  %2317 = vmatprep.subr.mxu1 %v3228_v0  ;;  %v3362_v18 = vld [vmem:[%s4412_s3 + $0x40] sm:$0xff]  ;;  %v3365_v19 = vld [vmem:[#allocation2 + $0x28] sm:$0xff]  ;;  %v3373_v20 = vld [vmem:[%s4412_s3 + $0x38] sm:$0xff] }
  0x15   :  { %2283 = vmatpush3.msra.mxu0 %v3281_v3  ;;  %2318 = vmatpush3.msra.mxu1 %v3307_v8  ;;  %v3376_v21 = vld [vmem:[#allocation2 + $0x20] sm:$0xff]  ;;  %v3384_v22 = vld [vmem:[%s4412_s3 + $0x30] sm:$0xff]  ;;  %v3387_v23 = vld [vmem:[#allocation2 + $0x18] sm:$0xff] }
  0x16   :  { %2284 = vmatprep.subr.mxu0 %v3228_v0  ;;  %2319 = vmatprep.subr.mxu1 %v3228_v0  ;;  %v3395_v24 = vld [vmem:[%s4412_s3 + $0x28] sm:$0xff]  ;;  %v3398_v25 = vld [vmem:[#allocation2 + $0x10] sm:$0xff]  ;;  %v3406_v26 = vld [vmem:[%s4412_s3 + $0x20] sm:$0xff] }
  0x17   :  { %2285 = vmatpush3.msra.mxu0 %v3285_v4  ;;  %2320 = vmatpush3.msra.mxu1 %v3318_v10  ;;  %v3409_v27 = vld [vmem:[#allocation2 + $0x8] sm:$0xff]  ;;  %v3417_v28 = vld [vmem:[%s4412_s3 + $0x18] sm:$0xff]  ;;  %v3420_v29 = vld [vmem:[#allocation2] sm:$0xff] }
  0x18   :  { %2286 = vmatprep.subr.mxu0 %v3228_v0  ;;  %2321 = vmatprep.subr.mxu1 %v3228_v0  ;;  %v76_v30 = vld [vmem:[%s4410_s1] sm:$0xff]  ;;  %v3470_v31 = vld [vmem:[%s4412_s3 + $0x10] sm:$0xff]  ;;  %v3477_v32 = vld [vmem:[%s4412_s3 + $0x8] sm:$0xff] }
  0x19   :  { %2287 = vmatpush3.msra.mxu0 %v3294_v6  ;;  %2322 = vmatpush3.msra.mxu1 %v3329_v12  ;;  %v3484_v33 = vld [vmem:[%s4412_s3] sm:$0xff]  ;;  %v1848_v44 = vld [vmem:[%s4409_s0 + $0x8] sm:$0xff]  ;;  %v1850_v53 = vld [vmem:[%s4409_s0 + $0x10] sm:$0xff] }
  0x1a   :  { %2288 = vmatprep.subr.mxu0 %v3228_v0  ;;  %2323 = vmatprep.subr.mxu1 %v3228_v0  ;;  %v77_v34 = vld [vmem:[%s4409_s0] sm:$0xff]  ;;  %v1852_v62 = vld [vmem:[%s4409_s0 + $0x18] sm:$0xff] }
  0x1b   :  { %2289 = vmatpush3.msra.mxu0 %v3310_v9  ;;  %2324 = vmatpush3.msra.mxu1 %v3340_v14  ;;  %v3531_v39 = vld [vmem:[%s4413_s4] ss:$0 sm:$0xff] }
  0x1c   :  { %2290 = vmatprep.subr.mxu0 %v3228_v0  ;;  %2325 = vmatprep.subr.mxu1 %v3228_v0 }
  0x1d   :  { %2291 = vmatpush3.msra.mxu0 %v3321_v11  ;;  %2326 = vmatpush3.msra.mxu1 %v3351_v16 }
  0x1e   :  { %2292 = vmatprep.subr.mxu0 %v3228_v0  ;;  %2327 = vmatprep.subr.mxu1 %v3228_v0 }
  0x1f   :  { %2293 = vmatpush3.msra.mxu0 %v3332_v13  ;;  %2328 = vmatpush3.msra.mxu1 %v3362_v18 }
  0x20   :  { %2294 = vmatprep.subr.mxu0 %v3228_v0  ;;  %2329 = vmatprep.subr.mxu1 %v3228_v0 }
  0x21   :  { %2295 = vmatpush3.msra.mxu0 %v3343_v15  ;;  %2330 = vmatpush3.msra.mxu1 %v3373_v20 }
  0x22   :  { %2296 = vmatprep.subr.mxu0 %v3228_v0  ;;  %2331 = vmatprep.subr.mxu1 %v3228_v0 }
  0x23   :  { %2297 = vmatpush3.msra.mxu0 %v3354_v17  ;;  %2332 = vmatpush3.msra.mxu1 %v3384_v22 }
  0x24   :  { %2298 = vmatprep.subr.mxu0 %v3228_v0  ;;  %2333 = vmatprep.subr.mxu1 %v3228_v0 }
  0x25   :  { %2299 = vmatpush3.msra.mxu0 %v3365_v19  ;;  %2334 = vmatpush3.msra.mxu1 %v3395_v24 }
  0x26   :  { %2300 = vmatprep.subr.mxu0 %v3228_v0  ;;  %2335 = vmatprep.subr.mxu1 %v3228_v0 }
  0x27   :  { %2301 = vmatpush3.msra.mxu0 %v3376_v21  ;;  %2336 = vmatpush3.msra.mxu1 %v3406_v26 }
  0x28   :  { %2302 = vmatprep.subr.mxu0 %v3228_v0  ;;  %2337 = vmatprep.subr.mxu1 %v3228_v0 }
  0x29   :  { %2303 = vmatpush3.msra.mxu0 %v3387_v23  ;;  %2338 = vmatpush3.msra.mxu1 %v3417_v28 }
  0x2a   :  { %2304 = vmatprep.subr.mxu0 %v3228_v0  ;;  %2339 = vmatprep.subr.mxu1 %v3228_v0 }
  0x2b   :  { %2305 = vmatpush3.msra.mxu0 %v3398_v25  ;;  %2340 = vmatpush3.msra.mxu1 %v3470_v31 }
  0x2c   :  { %2306 = vmatprep.subr.mxu0 %v3228_v0  ;;  %2341 = vmatprep.subr.mxu1 %v3228_v0 }
  0x2d   :  { %2307 = vmatpush3.msra.mxu0 %v3409_v27  ;;  %2342 = vmatpush3.msra.mxu1 %v3477_v32 }
  0x2e   :  { %2308 = vmatprep.subr.mxu0 %v3228_v0  ;;  %2343 = vmatprep.subr.mxu1 %v3228_v0 }
  0x2f   :  { %2309 = vmatpush3.msra.mxu0 %v3420_v29  ;;  %2344 = vmatpush3.msra.mxu1 %v3484_v33 }
  0x30   :  { %2311 = vmatmul.mubr.f32.vlgmr.msra.gmra.mxu0 %v76_v30  ;;  %2348 = vmatprep.subr.mxu0 %v3228_v0 }
  0x31   :  { %2349 = vmatpush3.msra.mxu0 %v3275_v1  ;;  %2380 = vmatprep.mubr.msk.f32.mxu0 %vm3229_vm0, %v3228_v0 }
  0x32   :  { %2350 = vmatprep.subr.mxu0 %v3228_v0  ;;  %2383 = vmatprep.subr.mxu1 %v3228_v0 }
  0x33   :  { %2351 = vmatpush3.msra.mxu0 %v3277_v2 }
  0x34   :  { %2352 = vmatprep.subr.mxu0 %v3228_v0 }
  0x35   :  { %2353 = vmatpush3.msra.mxu0 %v3281_v3 }
  0x36   :  { %2354 = vmatprep.subr.mxu0 %v3228_v0 }
  0x37   :  { %2355 = vmatpush3.msra.mxu0 %v3285_v4 }
  0x38   :  { %2356 = vmatprep.subr.mxu0 %v3228_v0 }
  0x39   :  { %2357 = vmatpush3.msra.mxu0 %v3294_v6 }
  0x3a   :  { %2358 = vmatprep.subr.mxu0 %v3228_v0 }
  0x3b   :  { %2359 = vmatpush3.msra.mxu0 %v3310_v9 }
  0x3c   :  { %2360 = vmatprep.subr.mxu0 %v3228_v0 }
  0x3d   :  { %2361 = vmatpush3.msra.mxu0 %v3321_v11 }
  0x3e   :  { %2362 = vmatprep.subr.mxu0 %v3228_v0 }
  0x3f   :  { %2363 = vmatpush3.msra.mxu0 %v3332_v13 }
  0x40   :  { %2364 = vmatprep.subr.mxu0 %v3228_v0 }
  0x41   :  { %2365 = vmatpush3.msra.mxu0 %v3343_v15 }
  0x42   :  { %2366 = vmatprep.subr.mxu0 %v3228_v0 }
  0x43   :  { %2367 = vmatpush3.msra.mxu0 %v3354_v17 }
  0x44   :  { %2368 = vmatprep.subr.mxu0 %v3228_v0 }
  0x45   :  { %2369 = vmatpush3.msra.mxu0 %v3365_v19 }
  0x46   :  { %2370 = vmatprep.subr.mxu0 %v3228_v0 }
  0x47   :  { %2371 = vmatpush3.msra.mxu0 %v3376_v21 }
  0x48   :  { %2372 = vmatprep.subr.mxu0 %v3228_v0 }
  0x49   :  { %2373 = vmatpush3.msra.mxu0 %v3387_v23 }
  0x4a   :  { %2374 = vmatprep.subr.mxu0 %v3228_v0 }
  0x4b   :  { %2375 = vmatpush3.msra.mxu0 %v3398_v25 }
  0x4c   :  { %2376 = vmatprep.subr.mxu0 %v3228_v0 }
  0x4d   :  { %2377 = vmatpush3.msra.mxu0 %v3409_v27 }
  0x4e   :  { %2378 = vmatprep.subr.mxu0 %v3228_v0 }
  0x4f   :  { %2379 = vmatpush3.msra.mxu0 %v3420_v29 }
  0x50   :  { %2418 = vmatprep.subr.mxu0 %v3228_v0 }
  0xf0   :  { %v144_v35 = vpop.f32.mrf.mxu0 }
  0xf1   :  { %v145_v36 = vadd.f32 %v144_v35, %v77_v34 }
  0xf2   :  { %v2312_v37 = vpop.f32.mrf.mxu0 }
  0xf3   :  { %v148_v38 = vmax.f32 %v145_v36, 0.0 }
  0xf5   :  { %149 = vst [vmem:[%s4414_s5] sm:$0xff] %v148_v38  ;;  %2346 = vmatmul.mubr.f32.vlgmr.msra.gmra.mxu1 %v148_v38 }
  0xf6   :  { %2384 = vmatpush3.msra.mxu1 %v3291_v5  ;;  %2415 = vmatprep.mubr.msk.f32.mxu1 %vm3229_vm0, %v3228_v0 }
  0xf7   :  { %2385 = vmatprep.subr.mxu1 %v3228_v0 }
  0xf8   :  { %2386 = vmatpush3.msra.mxu1 %v3300_v7 }
  0xf9   :  { %2387 = vmatprep.subr.mxu1 %v3228_v0 }
  0xfa   :  { %2388 = vmatpush3.msra.mxu1 %v3307_v8 }
  0xfb   :  { %2389 = vmatprep.subr.mxu1 %v3228_v0 }
  0xfc   :  { %2390 = vmatpush3.msra.mxu1 %v3318_v10 }
  0xfd   :  { %2391 = vmatprep.subr.mxu1 %v3228_v0 }
  0xfe   :  { %2392 = vmatpush3.msra.mxu1 %v3329_v12 }
  0xff   :  { %2393 = vmatprep.subr.mxu1 %v3228_v0 }
 0x100   :  { %2394 = vmatpush3.msra.mxu1 %v3340_v14 }
 0x101   :  { %2395 = vmatprep.subr.mxu1 %v3228_v0 }
 0x102   :  { %2396 = vmatpush3.msra.mxu1 %v3351_v16 }
 0x103   :  { %2397 = vmatprep.subr.mxu1 %v3228_v0 }
 0x104   :  { %2398 = vmatpush3.msra.mxu1 %v3362_v18 }
 0x105   :  { %2399 = vmatprep.subr.mxu1 %v3228_v0 }
 0x106   :  { %2400 = vmatpush3.msra.mxu1 %v3373_v20 }
 0x107   :  { %2401 = vmatprep.subr.mxu1 %v3228_v0 }
 0x108   :  { %2402 = vmatpush3.msra.mxu1 %v3384_v22 }
 0x109   :  { %2403 = vmatprep.subr.mxu1 %v3228_v0 }
 0x10a   :  { %2404 = vmatpush3.msra.mxu1 %v3395_v24 }
 0x10b   :  { %2405 = vmatprep.subr.mxu1 %v3228_v0 }
 0x10c   :  { %2406 = vmatpush3.msra.mxu1 %v3406_v26 }
 0x10d   :  { %2407 = vmatprep.subr.mxu1 %v3228_v0 }
 0x10e   :  { %2408 = vmatpush3.msra.mxu1 %v3417_v28 }
 0x10f   :  { %2409 = vmatprep.subr.mxu1 %v3228_v0 }
 0x110   :  { %2410 = vmatpush3.msra.mxu1 %v3470_v31 }
 0x111   :  { %2411 = vmatprep.subr.mxu1 %v3228_v0 }
 0x112   :  { %2412 = vmatpush3.msra.mxu1 %v3477_v32 }
 0x113   :  { %2413 = vmatprep.subr.mxu1 %v3228_v0 }
 0x114   :  { %2414 = vmatpush3.msra.mxu1 %v3484_v33 }
 0x115   :  { %2453 = vmatprep.subr.mxu1 %v3228_v0 }
 0x1b5   :  { %v216_v40 = vpop.f32.mrf.mxu1 }
 0x1b6   :  { %v217_v41 = vadd.f32 %v3531_v39, %v216_v40 }
 0x1b7   :  { %v2347_v42 = vpop.f32.mrf.mxu1 }
 0x1b8   :  { %3124 = vtanh.f32 %v217_v41  ;;  %v1854_v41 = vld [vmem:[%s4409_s0 + $0x20] sm:$0xff] }
 0x1c5   :  { %v3125_v43 = vpop.eup %3124 }
 0x1c6   :  { %2381 = vmatmul.mubr.f32.vlgmr.msra.gmra.mxu0 %v3125_v43 }
 0x1c7   :  { %2419 = vmatpush3.msra.mxu0 %v3275_v1  ;;  %2450 = vmatprep.mubr.msk.f32.mxu0 %vm3229_vm0, %v3228_v0 }
 0x1c8   :  { %2420 = vmatprep.subr.mxu0 %v3228_v0 }
 0x1c9   :  { %2421 = vmatpush3.msra.mxu0 %v3277_v2 }
 0x1ca   :  { %2422 = vmatprep.subr.mxu0 %v3228_v0 }
 0x1cb   :  { %2423 = vmatpush3.msra.mxu0 %v3281_v3 }
 0x1cc   :  { %2424 = vmatprep.subr.mxu0 %v3228_v0 }
 0x1cd   :  { %2425 = vmatpush3.msra.mxu0 %v3285_v4 }
 0x1ce   :  { %2426 = vmatprep.subr.mxu0 %v3228_v0 }
 0x1cf   :  { %2427 = vmatpush3.msra.mxu0 %v3294_v6 }
 0x1d0   :  { %2428 = vmatprep.subr.mxu0 %v3228_v0 }
 0x1d1   :  { %2429 = vmatpush3.msra.mxu0 %v3310_v9 }
 0x1d2   :  { %2430 = vmatprep.subr.mxu0 %v3228_v0 }
 0x1d3   :  { %2431 = vmatpush3.msra.mxu0 %v3321_v11 }
 0x1d4   :  { %2432 = vmatprep.subr.mxu0 %v3228_v0 }
 0x1d5   :  { %2433 = vmatpush3.msra.mxu0 %v3332_v13 }
 0x1d6   :  { %2434 = vmatprep.subr.mxu0 %v3228_v0 }
 0x1d7   :  { %2435 = vmatpush3.msra.mxu0 %v3343_v15 }
 0x1d8   :  { %2436 = vmatprep.subr.mxu0 %v3228_v0 }
 0x1d9   :  { %2437 = vmatpush3.msra.mxu0 %v3354_v17 }
 0x1da   :  { %2438 = vmatprep.subr.mxu0 %v3228_v0 }
 0x1db   :  { %2439 = vmatpush3.msra.mxu0 %v3365_v19 }
 0x1dc   :  { %2440 = vmatprep.subr.mxu0 %v3228_v0 }
 0x1dd   :  { %2441 = vmatpush3.msra.mxu0 %v3376_v21 }
 0x1de   :  { %2442 = vmatprep.subr.mxu0 %v3228_v0 }
 0x1df   :  { %2443 = vmatpush3.msra.mxu0 %v3387_v23 }
 0x1e0   :  { %2444 = vmatprep.subr.mxu0 %v3228_v0 }
 0x1e1   :  { %2445 = vmatpush3.msra.mxu0 %v3398_v25 }
 0x1e2   :  { %2446 = vmatprep.subr.mxu0 %v3228_v0 }
 0x1e3   :  { %2447 = vmatpush3.msra.mxu0 %v3409_v27 }
 0x1e4   :  { %2448 = vmatprep.subr.mxu0 %v3228_v0 }
 0x1e5   :  { %2449 = vmatpush3.msra.mxu0 %v3420_v29 }
 0x1e6   :  { %2488 = vmatprep.subr.mxu0 %v3228_v0 }
 0x286   :  { %v289_v45 = vpop.f32.mrf.mxu0 }
 0x287   :  { %v290_v46 = vadd.f32 %v1848_v44, %v289_v45 }
 0x288   :  { %v2382_v47 = vpop.f32.mrf.mxu0 }
 0x289   :  { %v293_v48 = vmax.f32 %v290_v46, 0.0  ;;  %v3992_v46 = vld [vmem:[#allocation2 + $0x8] sm:$0xff]  ;;  %v3996_v47 = vld [vmem:[#allocation2] sm:$0xff] }
 0x28b   :  { %1849 = vst [vmem:[%s4414_s5 + $0x8] sm:$0xff] %v293_v48  ;;  %2416 = vmatmul.mubr.f32.vlgmr.msra.gmra.mxu1 %v293_v48  ;;  %v1858_v48 = vld [vmem:[%s4409_s0 + $0x30] sm:$0xff] }
 0x28c   :  { %2454 = vmatpush3.msra.mxu1 %v3291_v5  ;;  %2485 = vmatprep.mubr.msk.f32.mxu1 %vm3229_vm0, %v3228_v0 }
 0x28d   :  { %2455 = vmatprep.subr.mxu1 %v3228_v0 }
 0x28e   :  { %2456 = vmatpush3.msra.mxu1 %v3300_v7 }
 0x28f   :  { %2457 = vmatprep.subr.mxu1 %v3228_v0 }
 0x290   :  { %2458 = vmatpush3.msra.mxu1 %v3307_v8 }
 0x291   :  { %2459 = vmatprep.subr.mxu1 %v3228_v0 }
 0x292   :  { %2460 = vmatpush3.msra.mxu1 %v3318_v10 }
 0x293   :  { %2461 = vmatprep.subr.mxu1 %v3228_v0 }
 0x294   :  { %2462 = vmatpush3.msra.mxu1 %v3329_v12 }
 0x295   :  { %2463 = vmatprep.subr.mxu1 %v3228_v0 }
 0x296   :  { %2464 = vmatpush3.msra.mxu1 %v3340_v14 }
 0x297   :  { %2465 = vmatprep.subr.mxu1 %v3228_v0 }
 0x298   :  { %2466 = vmatpush3.msra.mxu1 %v3351_v16 }
 0x299   :  { %2467 = vmatprep.subr.mxu1 %v3228_v0 }
 0x29a   :  { %2468 = vmatpush3.msra.mxu1 %v3362_v18 }
 0x29b   :  { %2469 = vmatprep.subr.mxu1 %v3228_v0 }
 0x29c   :  { %2470 = vmatpush3.msra.mxu1 %v3373_v20 }
 0x29d   :  { %2471 = vmatprep.subr.mxu1 %v3228_v0 }
 0x29e   :  { %2472 = vmatpush3.msra.mxu1 %v3384_v22 }
 0x29f   :  { %2473 = vmatprep.subr.mxu1 %v3228_v0 }
 0x2a0   :  { %2474 = vmatpush3.msra.mxu1 %v3395_v24 }
 0x2a1   :  { %2475 = vmatprep.subr.mxu1 %v3228_v0 }
 0x2a2   :  { %2476 = vmatpush3.msra.mxu1 %v3406_v26 }
 0x2a3   :  { %2477 = vmatprep.subr.mxu1 %v3228_v0 }
 0x2a4   :  { %2478 = vmatpush3.msra.mxu1 %v3417_v28 }
 0x2a5   :  { %2479 = vmatprep.subr.mxu1 %v3228_v0 }
 0x2a6   :  { %2480 = vmatpush3.msra.mxu1 %v3470_v31 }
 0x2a7   :  { %2481 = vmatprep.subr.mxu1 %v3228_v0 }
 0x2a8   :  { %2482 = vmatpush3.msra.mxu1 %v3477_v32 }
 0x2a9   :  { %2483 = vmatprep.subr.mxu1 %v3228_v0 }
 0x2aa   :  { %2484 = vmatpush3.msra.mxu1 %v3484_v33 }
 0x2ab   :  { %2523 = vmatprep.subr.mxu1 %v3228_v0 }
 0x34b   :  { %v362_v49 = vpop.f32.mrf.mxu1 }
 0x34c   :  { %v363_v50 = vadd.f32 %v3531_v39, %v362_v49 }
 0x34d   :  { %v2417_v51 = vpop.f32.mrf.mxu1 }
 0x34e   :  { %3126 = vtanh.f32 %v363_v50 }
 0x35b   :  { %v3127_v52 = vpop.eup %3126 }
 0x35c   :  { %2451 = vmatmul.mubr.f32.vlgmr.msra.gmra.mxu0 %v3127_v52 }
 0x35d   :  { %2489 = vmatpush3.msra.mxu0 %v3275_v1  ;;  %2520 = vmatprep.mubr.msk.f32.mxu0 %vm3229_vm0, %v3228_v0 }
 0x35e   :  { %2490 = vmatprep.subr.mxu0 %v3228_v0 }
 0x35f   :  { %2491 = vmatpush3.msra.mxu0 %v3277_v2 }
 0x360   :  { %2492 = vmatprep.subr.mxu0 %v3228_v0 }
 0x361   :  { %2493 = vmatpush3.msra.mxu0 %v3281_v3 }
 0x362   :  { %2494 = vmatprep.subr.mxu0 %v3228_v0 }
 0x363   :  { %2495 = vmatpush3.msra.mxu0 %v3285_v4 }
 0x364   :  { %2496 = vmatprep.subr.mxu0 %v3228_v0 }
 0x365   :  { %2497 = vmatpush3.msra.mxu0 %v3294_v6 }
 0x366   :  { %2498 = vmatprep.subr.mxu0 %v3228_v0 }
 0x367   :  { %2499 = vmatpush3.msra.mxu0 %v3310_v9 }
 0x368   :  { %2500 = vmatprep.subr.mxu0 %v3228_v0 }
 0x369   :  { %2501 = vmatpush3.msra.mxu0 %v3321_v11 }
 0x36a   :  { %2502 = vmatprep.subr.mxu0 %v3228_v0 }
 0x36b   :  { %2503 = vmatpush3.msra.mxu0 %v3332_v13 }
 0x36c   :  { %2504 = vmatprep.subr.mxu0 %v3228_v0 }
 0x36d   :  { %2505 = vmatpush3.msra.mxu0 %v3343_v15 }
 0x36e   :  { %2506 = vmatprep.subr.mxu0 %v3228_v0 }
 0x36f   :  { %2507 = vmatpush3.msra.mxu0 %v3354_v17 }
 0x370   :  { %2508 = vmatprep.subr.mxu0 %v3228_v0 }
 0x371   :  { %2509 = vmatpush3.msra.mxu0 %v3365_v19 }
 0x372   :  { %2510 = vmatprep.subr.mxu0 %v3228_v0 }
 0x373   :  { %2511 = vmatpush3.msra.mxu0 %v3376_v21 }
 0x374   :  { %2512 = vmatprep.subr.mxu0 %v3228_v0 }
 0x375   :  { %2513 = vmatpush3.msra.mxu0 %v3387_v23 }
 0x376   :  { %2514 = vmatprep.subr.mxu0 %v3228_v0 }
 0x377   :  { %2515 = vmatpush3.msra.mxu0 %v3398_v25 }
 0x378   :  { %2516 = vmatprep.subr.mxu0 %v3228_v0 }
 0x379   :  { %2517 = vmatpush3.msra.mxu0 %v3409_v27 }
 0x37a   :  { %2518 = vmatprep.subr.mxu0 %v3228_v0 }
 0x37b   :  { %2519 = vmatpush3.msra.mxu0 %v3420_v29 }
 0x37c   :  { %2558 = vmatprep.subr.mxu0 %v3228_v0 }
 0x41c   :  { %v435_v54 = vpop.f32.mrf.mxu0 }
 0x41d   :  { %v436_v55 = vadd.f32 %v1850_v53, %v435_v54  ;;  %v4021_v53 = vld [vmem:[%s4412_s3 + $0x50] sm:$0xff]  ;;  %v4028_v54 = vld [vmem:[%s4412_s3 + $0x48] sm:$0xff] }
 0x41e   :  { %v2452_v56 = vpop.f32.mrf.mxu0 }
 0x41f   :  { %v439_v57 = vmax.f32 %v436_v55, 0.0  ;;  %v4035_v55 = vld [vmem:[%s4412_s3 + $0x40] sm:$0xff]  ;;  %v4042_v56 = vld [vmem:[%s4412_s3 + $0x38] sm:$0xff] }
 0x421   :  { %1851 = vst [vmem:[%s4414_s5 + $0x10] sm:$0xff] %v439_v57  ;;  %2486 = vmatmul.mubr.f32.vlgmr.msra.gmra.mxu1 %v439_v57  ;;  %v4049_v57 = vld [vmem:[%s4412_s3 + $0x30] sm:$0xff] }
 0x422   :  { %2524 = vmatpush3.msra.mxu1 %v3291_v5  ;;  %2555 = vmatprep.mubr.msk.f32.mxu1 %vm3229_vm0, %v3228_v0 }
 0x423   :  { %2525 = vmatprep.subr.mxu1 %v3228_v0 }
 0x424   :  { %2526 = vmatpush3.msra.mxu1 %v3300_v7 }
 0x425   :  { %2527 = vmatprep.subr.mxu1 %v3228_v0 }
 0x426   :  { %2528 = vmatpush3.msra.mxu1 %v3307_v8 }
 0x427   :  { %2529 = vmatprep.subr.mxu1 %v3228_v0 }
 0x428   :  { %2530 = vmatpush3.msra.mxu1 %v3318_v10 }
 0x429   :  { %2531 = vmatprep.subr.mxu1 %v3228_v0 }
 0x42a   :  { %2532 = vmatpush3.msra.mxu1 %v3329_v12 }
 0x42b   :  { %2533 = vmatprep.subr.mxu1 %v3228_v0 }
 0x42c   :  { %2534 = vmatpush3.msra.mxu1 %v3340_v14 }
 0x42d   :  { %2535 = vmatprep.subr.mxu1 %v3228_v0 }
 0x42e   :  { %2536 = vmatpush3.msra.mxu1 %v3351_v16 }
 0x42f   :  { %2537 = vmatprep.subr.mxu1 %v3228_v0 }
 0x430   :  { %2538 = vmatpush3.msra.mxu1 %v3362_v18 }
 0x431   :  { %2539 = vmatprep.subr.mxu1 %v3228_v0 }
 0x432   :  { %2540 = vmatpush3.msra.mxu1 %v3373_v20 }
 0x433   :  { %2541 = vmatprep.subr.mxu1 %v3228_v0 }
 0x434   :  { %2542 = vmatpush3.msra.mxu1 %v3384_v22 }
 0x435   :  { %2543 = vmatprep.subr.mxu1 %v3228_v0 }
 0x436   :  { %2544 = vmatpush3.msra.mxu1 %v3395_v24 }
 0x437   :  { %2545 = vmatprep.subr.mxu1 %v3228_v0 }
 0x438   :  { %2546 = vmatpush3.msra.mxu1 %v3406_v26 }
 0x439   :  { %2547 = vmatprep.subr.mxu1 %v3228_v0 }
 0x43a   :  { %2548 = vmatpush3.msra.mxu1 %v3417_v28 }
 0x43b   :  { %2549 = vmatprep.subr.mxu1 %v3228_v0 }
 0x43c   :  { %2550 = vmatpush3.msra.mxu1 %v3470_v31 }
 0x43d   :  { %2551 = vmatprep.subr.mxu1 %v3228_v0 }
 0x43e   :  { %2552 = vmatpush3.msra.mxu1 %v3477_v32 }
 0x43f   :  { %2553 = vmatprep.subr.mxu1 %v3228_v0 }
 0x440   :  { %2554 = vmatpush3.msra.mxu1 %v3484_v33 }
 0x441   :  { %2593 = vmatprep.subr.mxu1 %v3228_v0 }
 0x4e1   :  { %v508_v58 = vpop.f32.mrf.mxu1 }
 0x4e2   :  { %v509_v59 = vadd.f32 %v3531_v39, %v508_v58  ;;  %v4056_v58 = vld [vmem:[%s4412_s3 + $0x28] sm:$0xff] }
 0x4e3   :  { %v2487_v60 = vpop.f32.mrf.mxu1 }
 0x4e4   :  { %3128 = vtanh.f32 %v509_v59  ;;  %v4063_v59 = vld [vmem:[%s4412_s3 + $0x20] sm:$0xff]  ;;  %v4070_v60 = vld [vmem:[%s4412_s3 + $0x18] sm:$0xff] }
 0x4f1   :  { %v3129_v61 = vpop.eup %3128 }
 0x4f2   :  { %2521 = vmatmul.mubr.f32.vlgmr.msra.gmra.mxu0 %v3129_v61  ;;  %v4077_v61 = vld [vmem:[%s4412_s3 + $0x10] sm:$0xff] }
 0x4f3   :  { %2559 = vmatpush3.msra.mxu0 %v3275_v1  ;;  %2590 = vmatprep.mubr.msk.f32.mxu0 %vm3229_vm0, %v3228_v0 }
 0x4f4   :  { %2560 = vmatprep.subr.mxu0 %v3228_v0 }
 0x4f5   :  { %2561 = vmatpush3.msra.mxu0 %v3277_v2 }
 0x4f6   :  { %2562 = vmatprep.subr.mxu0 %v3228_v0 }
 0x4f7   :  { %2563 = vmatpush3.msra.mxu0 %v3281_v3 }
 0x4f8   :  { %2564 = vmatprep.subr.mxu0 %v3228_v0 }
 0x4f9   :  { %2565 = vmatpush3.msra.mxu0 %v3285_v4 }
 0x4fa   :  { %2566 = vmatprep.subr.mxu0 %v3228_v0 }
 0x4fb   :  { %2567 = vmatpush3.msra.mxu0 %v3294_v6 }
 0x4fc   :  { %2568 = vmatprep.subr.mxu0 %v3228_v0 }
 0x4fd   :  { %2569 = vmatpush3.msra.mxu0 %v3310_v9 }
 0x4fe   :  { %2570 = vmatprep.subr.mxu0 %v3228_v0 }
 0x4ff   :  { %2571 = vmatpush3.msra.mxu0 %v3321_v11 }
 0x500   :  { %2572 = vmatprep.subr.mxu0 %v3228_v0 }
 0x501   :  { %2573 = vmatpush3.msra.mxu0 %v3332_v13 }
 0x502   :  { %2574 = vmatprep.subr.mxu0 %v3228_v0 }
 0x503   :  { %2575 = vmatpush3.msra.mxu0 %v3343_v15 }
 0x504   :  { %2576 = vmatprep.subr.mxu0 %v3228_v0 }
 0x505   :  { %2577 = vmatpush3.msra.mxu0 %v3354_v17 }
 0x506   :  { %2578 = vmatprep.subr.mxu0 %v3228_v0 }
 0x507   :  { %2579 = vmatpush3.msra.mxu0 %v3365_v19 }
 0x508   :  { %2580 = vmatprep.subr.mxu0 %v3228_v0 }
 0x509   :  { %2581 = vmatpush3.msra.mxu0 %v3376_v21 }
 0x50a   :  { %2582 = vmatprep.subr.mxu0 %v3228_v0 }
 0x50b   :  { %2583 = vmatpush3.msra.mxu0 %v3387_v23 }
 0x50c   :  { %2584 = vmatprep.subr.mxu0 %v3228_v0 }
 0x50d   :  { %2585 = vmatpush3.msra.mxu0 %v3398_v25 }
 0x50e   :  { %2586 = vmatprep.subr.mxu0 %v3228_v0 }
 0x50f   :  { %2587 = vmatpush3.msra.mxu0 %v3409_v27 }
 0x510   :  { %2588 = vmatprep.subr.mxu0 %v3228_v0 }
 0x511   :  { %2589 = vmatpush3.msra.mxu0 %v3420_v29 }
 0x512   :  { %2628 = vmatprep.subr.mxu0 %v3228_v0 }
 0x5b2   :  { %v581_v63 = vpop.f32.mrf.mxu0 }
 0x5b3   :  { %v582_v30 = vadd.f32 %v1852_v62, %v581_v63  ;;  %v4084_v62 = vld [vmem:[%s4412_s3 + $0x8] sm:$0xff]  ;;  %v4091_v63 = vld [vmem:[%s4412_s3] sm:$0xff] }
 0x5b4   :  { %v2522_v34 = vpop.f32.mrf.mxu0 }
 0x5b5   :  { %v585_v35 = vmax.f32 %v582_v30, 0.0 }
 0x5b7   :  { %1853 = vst [vmem:[%s4414_s5 + $0x18] sm:$0xff] %v585_v35  ;;  %2556 = vmatmul.mubr.f32.vlgmr.msra.gmra.mxu1 %v585_v35 }
 0x5b8   :  { %2594 = vmatpush3.msra.mxu1 %v3291_v5  ;;  %2625 = vmatprep.mubr.msk.f32.mxu1 %vm3229_vm0, %v3228_v0 }
 0x5b9   :  { %2595 = vmatprep.subr.mxu1 %v3228_v0 }
 0x5ba   :  { %2596 = vmatpush3.msra.mxu1 %v3300_v7 }
 0x5bb   :  { %2597 = vmatprep.subr.mxu1 %v3228_v0 }
 0x5bc   :  { %2598 = vmatpush3.msra.mxu1 %v3307_v8 }
 0x5bd   :  { %2599 = vmatprep.subr.mxu1 %v3228_v0 }
 0x5be   :  { %2600 = vmatpush3.msra.mxu1 %v3318_v10 }
 0x5bf   :  { %2601 = vmatprep.subr.mxu1 %v3228_v0 }
 0x5c0   :  { %2602 = vmatpush3.msra.mxu1 %v3329_v12 }
 0x5c1   :  { %2603 = vmatprep.subr.mxu1 %v3228_v0 }
 0x5c2   :  { %2604 = vmatpush3.msra.mxu1 %v3340_v14 }
 0x5c3   :  { %2605 = vmatprep.subr.mxu1 %v3228_v0 }
 0x5c4   :  { %2606 = vmatpush3.msra.mxu1 %v3351_v16 }
 0x5c5   :  { %2607 = vmatprep.subr.mxu1 %v3228_v0 }
 0x5c6   :  { %2608 = vmatpush3.msra.mxu1 %v3362_v18 }
 0x5c7   :  { %2609 = vmatprep.subr.mxu1 %v3228_v0 }
 0x5c8   :  { %2610 = vmatpush3.msra.mxu1 %v3373_v20 }
 0x5c9   :  { %2611 = vmatprep.subr.mxu1 %v3228_v0 }
 0x5ca   :  { %2612 = vmatpush3.msra.mxu1 %v3384_v22 }
 0x5cb   :  { %2613 = vmatprep.subr.mxu1 %v3228_v0 }
 0x5cc   :  { %2614 = vmatpush3.msra.mxu1 %v3395_v24 }
 0x5cd   :  { %2615 = vmatprep.subr.mxu1 %v3228_v0 }
 0x5ce   :  { %2616 = vmatpush3.msra.mxu1 %v3406_v26 }
 0x5cf   :  { %2617 = vmatprep.subr.mxu1 %v3228_v0 }
 0x5d0   :  { %2618 = vmatpush3.msra.mxu1 %v3417_v28 }
 0x5d1   :  { %2619 = vmatprep.subr.mxu1 %v3228_v0 }
 0x5d2   :  { %2620 = vmatpush3.msra.mxu1 %v3470_v31 }
 0x5d3   :  { %2621 = vmatprep.subr.mxu1 %v3228_v0 }
 0x5d4   :  { %2622 = vmatpush3.msra.mxu1 %v3477_v32 }
 0x5d5   :  { %2623 = vmatprep.subr.mxu1 %v3228_v0 }
 0x5d6   :  { %2624 = vmatpush3.msra.mxu1 %v3484_v33 }
 0x5d7   :  { %2663 = vmatprep.subr.mxu1 %v3228_v0 }
 0x677   :  { %v654_v36 = vpop.f32.mrf.mxu1 }
 0x678   :  { %v655_v37 = vadd.f32 %v3531_v39, %v654_v36 }
 0x679   :  { %v2557_v38 = vpop.f32.mrf.mxu1 }
 0x67a   :  { %3130 = vtanh.f32 %v655_v37 }
 0x687   :  { %v3131_v40 = vpop.eup %3130 }
 0x688   :  { %2591 = vmatmul.mubr.f32.vlgmr.msra.gmra.mxu0 %v3131_v40 }
 0x689   :  { %2629 = vmatpush3.msra.mxu0 %v3275_v1  ;;  %2660 = vmatprep.mubr.msk.f32.mxu0 %vm3229_vm0, %v3228_v0 }
 0x68a   :  { %2630 = vmatprep.subr.mxu0 %v3228_v0 }
 0x68b   :  { %2631 = vmatpush3.msra.mxu0 %v3277_v2 }
 0x68c   :  { %2632 = vmatprep.subr.mxu0 %v3228_v0 }
 0x68d   :  { %2633 = vmatpush3.msra.mxu0 %v3281_v3 }
 0x68e   :  { %2634 = vmatprep.subr.mxu0 %v3228_v0 }
 0x68f   :  { %2635 = vmatpush3.msra.mxu0 %v3285_v4 }
 0x690   :  { %2636 = vmatprep.subr.mxu0 %v3228_v0 }
 0x691   :  { %2637 = vmatpush3.msra.mxu0 %v3294_v6 }
 0x692   :  { %2638 = vmatprep.subr.mxu0 %v3228_v0 }
 0x693   :  { %2639 = vmatpush3.msra.mxu0 %v3310_v9 }
 0x694   :  { %2640 = vmatprep.subr.mxu0 %v3228_v0 }
 0x695   :  { %2641 = vmatpush3.msra.mxu0 %v3321_v11 }
 0x696   :  { %2642 = vmatprep.subr.mxu0 %v3228_v0 }
 0x697   :  { %2643 = vmatpush3.msra.mxu0 %v3332_v13 }
 0x698   :  { %2644 = vmatprep.subr.mxu0 %v3228_v0 }
 0x699   :  { %2645 = vmatpush3.msra.mxu0 %v3343_v15 }
 0x69a   :  { %2646 = vmatprep.subr.mxu0 %v3228_v0 }
 0x69b   :  { %2647 = vmatpush3.msra.mxu0 %v3354_v17 }
 0x69c   :  { %2648 = vmatprep.subr.mxu0 %v3228_v0 }
 0x69d   :  { %2649 = vmatpush3.msra.mxu0 %v3365_v19 }
 0x69e   :  { %2650 = vmatprep.subr.mxu0 %v3228_v0 }
 0x69f   :  { %2651 = vmatpush3.msra.mxu0 %v3376_v21 }
 0x6a0   :  { %2652 = vmatprep.subr.mxu0 %v3228_v0 }
 0x6a1   :  { %2653 = vmatpush3.msra.mxu0 %v3387_v23 }
 0x6a2   :  { %2654 = vmatprep.subr.mxu0 %v3228_v0 }
 0x6a3   :  { %2655 = vmatpush3.msra.mxu0 %v3398_v25 }
 0x6a4   :  { %2656 = vmatprep.subr.mxu0 %v3228_v0 }
 0x6a5   :  { %2657 = vmatpush3.msra.mxu0 %v3409_v27 }
 0x6a6   :  { %2658 = vmatprep.subr.mxu0 %v3228_v0 }
 0x6a7   :  { %2659 = vmatpush3.msra.mxu0 %v3420_v29 }
 0x6a8   :  { %2698 = vmatprep.subr.mxu0 %v3228_v0 }
 0x748   :  { %v727_v42 = vpop.f32.mrf.mxu0 }
 0x749   :  { %v728_v43 = vadd.f32 %v1854_v41, %v727_v42 }
 0x74a   :  { %v2592_v44 = vpop.f32.mrf.mxu0 }
 0x74b   :  { %v731_v45 = vmax.f32 %v728_v43, 0.0  ;;  %v4173_v43 = vld [vmem:[%s4413_s4] ss:$0 sm:$0xff] }
 0x74d   :  { %1855 = vst [vmem:[%s4414_s5 + $0x20] sm:$0xff] %v731_v45  ;;  %2626 = vmatmul.mubr.f32.vlgmr.msra.gmra.mxu1 %v731_v45 }
 0x74e   :  { %2664 = vmatpush3.msra.mxu1 %v3291_v5  ;;  %2695 = vmatprep.mubr.msk.f32.mxu1 %vm3229_vm0, %v3228_v0 }
 0x74f   :  { %2665 = vmatprep.subr.mxu1 %v3228_v0 }
 0x750   :  { %2666 = vmatpush3.msra.mxu1 %v3300_v7 }
 0x751   :  { %2667 = vmatprep.subr.mxu1 %v3228_v0 }
 0x752   :  { %2668 = vmatpush3.msra.mxu1 %v3307_v8 }
 0x753   :  { %2669 = vmatprep.subr.mxu1 %v3228_v0 }
 0x754   :  { %2670 = vmatpush3.msra.mxu1 %v3318_v10 }
 0x755   :  { %2671 = vmatprep.subr.mxu1 %v3228_v0 }
 0x756   :  { %2672 = vmatpush3.msra.mxu1 %v3329_v12  ;;  %v3893_v12 = vld [vmem:[%s4412_s3 + $0x68] sm:$0xff] }
 0x757   :  { %2673 = vmatprep.subr.mxu1 %v3228_v0 }
 0x758   :  { %2674 = vmatpush3.msra.mxu1 %v3340_v14 }
 0x759   :  { %2675 = vmatprep.subr.mxu1 %v3228_v0 }
 0x75a   :  { %2676 = vmatpush3.msra.mxu1 %v3351_v16 }
 0x75b   :  { %2677 = vmatprep.subr.mxu1 %v3228_v0 }
 0x75c   :  { %2678 = vmatpush3.msra.mxu1 %v3362_v18 }
 0x75d   :  { %2679 = vmatprep.subr.mxu1 %v3228_v0 }
 0x75e   :  { %2680 = vmatpush3.msra.mxu1 %v3373_v20 }
 0x75f   :  { %2681 = vmatprep.subr.mxu1 %v3228_v0 }
 0x760   :  { %2682 = vmatpush3.msra.mxu1 %v3384_v22 }
 0x761   :  { %2683 = vmatprep.subr.mxu1 %v3228_v0 }
 0x762   :  { %2684 = vmatpush3.msra.mxu1 %v3395_v24 }
 0x763   :  { %2685 = vmatprep.subr.mxu1 %v3228_v0 }
 0x764   :  { %2686 = vmatpush3.msra.mxu1 %v3406_v26 }
 0x765   :  { %2687 = vmatprep.subr.mxu1 %v3228_v0 }
 0x766   :  { %2688 = vmatpush3.msra.mxu1 %v3417_v28 }
 0x767   :  { %2689 = vmatprep.subr.mxu1 %v3228_v0 }
 0x768   :  { %2690 = vmatpush3.msra.mxu1 %v3470_v31 }
 0x769   :  { %2691 = vmatprep.subr.mxu1 %v3228_v0 }
 0x76a   :  { %2692 = vmatpush3.msra.mxu1 %v3477_v32 }
 0x76b   :  { %2693 = vmatprep.subr.mxu1 %v3228_v0 }
 0x76c   :  { %2694 = vmatpush3.msra.mxu1 %v3484_v33 }
 0x76d   :  { %2733 = vmatprep.subr.mxu1 %v3228_v0 }
 0x80d   :  { %v800_v5 = vpop.f32.mrf.mxu1 }
 0x80e   :  { %v801_v7 = vadd.f32 %v3531_v39, %v800_v5 }
 0x80f   :  { %v2627_v8 = vpop.f32.mrf.mxu1 }
 0x810   :  { %3132 = vtanh.f32 %v801_v7  ;;  %v1862_v7 = vld [vmem:[%s4409_s0 + $0x40] sm:$0xff] }
 0x81d   :  { %v3133_v10 = vpop.eup %3132 }
 0x81e   :  { %2661 = vmatmul.mubr.f32.vlgmr.msra.gmra.mxu0 %v3133_v10 }
 0x81f   :  { %2699 = vmatpush3.msra.mxu0 %v3275_v1  ;;  %2730 = vmatprep.mubr.msk.f32.mxu0 %vm3229_vm0, %v3228_v0  ;;  %v1856_v1 = vld [vmem:[%s4409_s0 + $0x28] sm:$0xff] }
 0x820   :  { %2700 = vmatprep.subr.mxu0 %v3228_v0 }
 0x821   :  { %2701 = vmatpush3.msra.mxu0 %v3277_v2 }
 0x822   :  { %2702 = vmatprep.subr.mxu0 %v3228_v0 }
 0x823   :  { %2703 = vmatpush3.msra.mxu0 %v3281_v3 }
 0x824   :  { %2704 = vmatprep.subr.mxu0 %v3228_v0 }
 0x825   :  { %2705 = vmatpush3.msra.mxu0 %v3285_v4 }
 0x826   :  { %2706 = vmatprep.subr.mxu0 %v3228_v0 }
 0x827   :  { %2707 = vmatpush3.msra.mxu0 %v3294_v6 }
 0x828   :  { %2708 = vmatprep.subr.mxu0 %v3228_v0 }
 0x829   :  { %2709 = vmatpush3.msra.mxu0 %v3310_v9  ;;  %v3877_v9 = vld [vmem:[%s4412_s3 + $0x78] sm:$0xff] }
 0x82a   :  { %2710 = vmatprep.subr.mxu0 %v3228_v0 }
 0x82b   :  { %2711 = vmatpush3.msra.mxu0 %v3321_v11  ;;  %v3886_v11 = vld [vmem:[%s4412_s3 + $0x70] sm:$0xff] }
 0x82c   :  { %2712 = vmatprep.subr.mxu0 %v3228_v0 }
 0x82d   :  { %2713 = vmatpush3.msra.mxu0 %v3332_v13  ;;  %v3900_v13 = vld [vmem:[%s4412_s3 + $0x60] sm:$0xff] }
 0x82e   :  { %2714 = vmatprep.subr.mxu0 %v3228_v0 }
 0x82f   :  { %2715 = vmatpush3.msra.mxu0 %v3343_v15  ;;  %v3907_v15 = vld [vmem:[%s4412_s3 + $0x58] sm:$0xff] }
 0x830   :  { %2716 = vmatprep.subr.mxu0 %v3228_v0 }
 0x831   :  { %2717 = vmatpush3.msra.mxu0 %v3354_v17 }
 0x832   :  { %2718 = vmatprep.subr.mxu0 %v3228_v0 }
 0x833   :  { %2719 = vmatpush3.msra.mxu0 %v3365_v19  ;;  %v3934_v19 = vld [vmem:[#allocation2 + $0x78] sm:$0xff] }
 0x834   :  { %2720 = vmatprep.subr.mxu0 %v3228_v0 }
 0x835   :  { %2721 = vmatpush3.msra.mxu0 %v3376_v21  ;;  %v3944_v21 = vld [vmem:[#allocation2 + $0x68] sm:$0xff] }
 0x836   :  { %2722 = vmatprep.subr.mxu0 %v3228_v0 }
 0x837   :  { %2723 = vmatpush3.msra.mxu0 %v3387_v23  ;;  %v3952_v23 = vld [vmem:[#allocation2 + $0x58] sm:$0xff] }
 0x838   :  { %2724 = vmatprep.subr.mxu0 %v3228_v0 }
 0x839   :  { %2725 = vmatpush3.msra.mxu0 %v3398_v25  ;;  %v3960_v25 = vld [vmem:[#allocation2 + $0x48] sm:$0xff] }
 0x83a   :  { %2726 = vmatprep.subr.mxu0 %v3228_v0 }
 0x83b   :  { %2727 = vmatpush3.msra.mxu0 %v3409_v27  ;;  %v3968_v27 = vld [vmem:[#allocation2 + $0x38] sm:$0xff] }
 0x83c   :  { %2728 = vmatprep.subr.mxu0 %v3228_v0 }
 0x83d   :  { %2729 = vmatpush3.msra.mxu0 %v3420_v29  ;;  %v3976_v29 = vld [vmem:[#allocation2 + $0x28] sm:$0xff] }
 0x83e   :  { %2768 = vmatprep.subr.mxu0 %v3228_v0 }
 0x8de   :  { %v873_v2 = vpop.f32.mrf.mxu0 }
 0x8df   :  { %v874_v3 = vadd.f32 %v1856_v1, %v873_v2 }
 0x8e0   :  { %v2662_v4 = vpop.f32.mrf.mxu0 }
 0x8e1   :  { %v877_v6 = vmax.f32 %v874_v3, 0.0 }
 0x8e3   :  { %1857 = vst [vmem:[%s4414_s5 + $0x28] sm:$0xff] %v877_v6  ;;  %2696 = vmatmul.mubr.f32.vlgmr.msra.gmra.mxu1 %v877_v6 }
 0x8e4   :  { %2734 = vmatpush3.msra.mxu1 %v3877_v9  ;;  %2765 = vmatprep.mubr.msk.f32.mxu1 %vm3229_vm0, %v3228_v0 }
 0x8e5   :  { %2735 = vmatprep.subr.mxu1 %v3228_v0 }
 0x8e6   :  { %2736 = vmatpush3.msra.mxu1 %v3886_v11 }
 0x8e7   :  { %2737 = vmatprep.subr.mxu1 %v3228_v0 }
 0x8e8   :  { %2738 = vmatpush3.msra.mxu1 %v3893_v12 }
 0x8e9   :  { %2739 = vmatprep.subr.mxu1 %v3228_v0 }
 0x8ea   :  { %2740 = vmatpush3.msra.mxu1 %v3900_v13 }
 0x8eb   :  { %2741 = vmatprep.subr.mxu1 %v3228_v0 }
 0x8ec   :  { %2742 = vmatpush3.msra.mxu1 %v3907_v15 }
 0x8ed   :  { %2743 = vmatprep.subr.mxu1 %v3228_v0 }
 0x8ee   :  { %2744 = vmatpush3.msra.mxu1 %v3340_v14 }
 0x8ef   :  { %2745 = vmatprep.subr.mxu1 %v3228_v0 }
 0x8f0   :  { %2746 = vmatpush3.msra.mxu1 %v3351_v16 }
 0x8f1   :  { %2747 = vmatprep.subr.mxu1 %v3228_v0 }
 0x8f2   :  { %2748 = vmatpush3.msra.mxu1 %v3362_v18 }
 0x8f3   :  { %2749 = vmatprep.subr.mxu1 %v3228_v0 }
 0x8f4   :  { %2750 = vmatpush3.msra.mxu1 %v3373_v20  ;;  %v3940_v20 = vld [vmem:[#allocation2 + $0x70] sm:$0xff] }
 0x8f5   :  { %2751 = vmatprep.subr.mxu1 %v3228_v0 }
 0x8f6   :  { %2752 = vmatpush3.msra.mxu1 %v3384_v22  ;;  %v3948_v22 = vld [vmem:[#allocation2 + $0x60] sm:$0xff] }
 0x8f7   :  { %2753 = vmatprep.subr.mxu1 %v3228_v0 }
 0x8f8   :  { %2754 = vmatpush3.msra.mxu1 %v3395_v24  ;;  %v3956_v24 = vld [vmem:[#allocation2 + $0x50] sm:$0xff] }
 0x8f9   :  { %2755 = vmatprep.subr.mxu1 %v3228_v0 }
 0x8fa   :  { %2756 = vmatpush3.msra.mxu1 %v3406_v26  ;;  %v3964_v26 = vld [vmem:[#allocation2 + $0x40] sm:$0xff] }
 0x8fb   :  { %2757 = vmatprep.subr.mxu1 %v3228_v0 }
 0x8fc   :  { %2758 = vmatpush3.msra.mxu1 %v3417_v28  ;;  %v3972_v28 = vld [vmem:[#allocation2 + $0x30] sm:$0xff] }
 0x8fd   :  { %2759 = vmatprep.subr.mxu1 %v3228_v0 }
 0x8fe   :  { %2760 = vmatpush3.msra.mxu1 %v3470_v31  ;;  %v3980_v31 = vld [vmem:[#allocation2 + $0x20] sm:$0xff] }
 0x8ff   :  { %2761 = vmatprep.subr.mxu1 %v3228_v0 }
 0x900   :  { %2762 = vmatpush3.msra.mxu1 %v3477_v32  ;;  %v3984_v32 = vld [vmem:[#allocation2 + $0x18] sm:$0xff] }
 0x901   :  { %2763 = vmatprep.subr.mxu1 %v3228_v0 }
 0x902   :  { %2764 = vmatpush3.msra.mxu1 %v3484_v33  ;;  %v3988_v33 = vld [vmem:[#allocation2 + $0x10] sm:$0xff] }
 0x903   :  { %2803 = vmatprep.subr.mxu1 %v3228_v0 }
 0x9a3   :  { %v946_v14 = vpop.f32.mrf.mxu1 }
 0x9a4   :  { %v947_v16 = vadd.f32 %v3531_v39, %v946_v14 }
 0x9a5   :  { %v2697_v17 = vpop.f32.mrf.mxu1 }
 0x9a6   :  { %3134 = vtanh.f32 %v947_v16  ;;  %v1864_v16 = vld [vmem:[%s4409_s0 + $0x48] sm:$0xff] }
 0x9b3   :  { %v3135_v18 = vpop.eup %3134 }
 0x9b4   :  { %2731 = vmatmul.mubr.f32.vlgmr.msra.gmra.mxu0 %v3135_v18 }
 0x9b5   :  { %2769 = vmatpush3.msra.mxu0 %v3934_v19  ;;  %2800 = vmatprep.mubr.msk.f32.mxu0 %vm3229_vm0, %v3228_v0 }
 0x9b6   :  { %2770 = vmatprep.subr.mxu0 %v3228_v0 }
 0x9b7   :  { %2771 = vmatpush3.msra.mxu0 %v3940_v20 }
 0x9b8   :  { %2772 = vmatprep.subr.mxu0 %v3228_v0 }
 0x9b9   :  { %2773 = vmatpush3.msra.mxu0 %v3944_v21 }
 0x9ba   :  { %2774 = vmatprep.subr.mxu0 %v3228_v0 }
 0x9bb   :  { %2775 = vmatpush3.msra.mxu0 %v3948_v22 }
 0x9bc   :  { %2776 = vmatprep.subr.mxu0 %v3228_v0 }
 0x9bd   :  { %2777 = vmatpush3.msra.mxu0 %v3952_v23 }
 0x9be   :  { %2778 = vmatprep.subr.mxu0 %v3228_v0 }
 0x9bf   :  { %2779 = vmatpush3.msra.mxu0 %v3956_v24 }
 0x9c0   :  { %2780 = vmatprep.subr.mxu0 %v3228_v0 }
 0x9c1   :  { %2781 = vmatpush3.msra.mxu0 %v3960_v25 }
 0x9c2   :  { %2782 = vmatprep.subr.mxu0 %v3228_v0 }
 0x9c3   :  { %2783 = vmatpush3.msra.mxu0 %v3964_v26 }
 0x9c4   :  { %2784 = vmatprep.subr.mxu0 %v3228_v0 }
 0x9c5   :  { %2785 = vmatpush3.msra.mxu0 %v3968_v27 }
 0x9c6   :  { %2786 = vmatprep.subr.mxu0 %v3228_v0 }
 0x9c7   :  { %2787 = vmatpush3.msra.mxu0 %v3972_v28 }
 0x9c8   :  { %2788 = vmatprep.subr.mxu0 %v3228_v0 }
 0x9c9   :  { %2789 = vmatpush3.msra.mxu0 %v3976_v29 }
 0x9ca   :  { %2790 = vmatprep.subr.mxu0 %v3228_v0 }
 0x9cb   :  { %2791 = vmatpush3.msra.mxu0 %v3980_v31 }
 0x9cc   :  { %2792 = vmatprep.subr.mxu0 %v3228_v0 }
 0x9cd   :  { %2793 = vmatpush3.msra.mxu0 %v3984_v32 }
 0x9ce   :  { %2794 = vmatprep.subr.mxu0 %v3228_v0 }
 0x9cf   :  { %2795 = vmatpush3.msra.mxu0 %v3988_v33 }
 0x9d0   :  { %2796 = vmatprep.subr.mxu0 %v3228_v0 }
 0x9d1   :  { %2797 = vmatpush3.msra.mxu0 %v3992_v46 }
 0x9d2   :  { %2798 = vmatprep.subr.mxu0 %v3228_v0 }
 0x9d3   :  { %2799 = vmatpush3.msra.mxu0 %v3996_v47 }
 0x9d4   :  { %2838 = vmatprep.subr.mxu0 %v3228_v0 }
 0xa74   :  { %v1019_v49 = vpop.f32.mrf.mxu0 }
 0xa75   :  { %v1020_v50 = vadd.f32 %v1858_v48, %v1019_v49 }
 0xa76   :  { %v2732_v51 = vpop.f32.mrf.mxu0 }
 0xa77   :  { %v1023_v52 = vmax.f32 %v1020_v50, 0.0 }
 0xa79   :  { %1859 = vst [vmem:[%s4414_s5 + $0x30] sm:$0xff] %v1023_v52  ;;  %2766 = vmatmul.mubr.f32.vlgmr.msra.gmra.mxu1 %v1023_v52 }
 0xa7a   :  { %2804 = vmatpush3.msra.mxu1 %v3877_v9  ;;  %2835 = vmatprep.mubr.msk.f32.mxu1 %vm3229_vm0, %v3228_v0 }
 0xa7b   :  { %2805 = vmatprep.subr.mxu1 %v3228_v0 }
 0xa7c   :  { %2806 = vmatpush3.msra.mxu1 %v3886_v11 }
 0xa7d   :  { %2807 = vmatprep.subr.mxu1 %v3228_v0 }
 0xa7e   :  { %2808 = vmatpush3.msra.mxu1 %v3893_v12 }
 0xa7f   :  { %2809 = vmatprep.subr.mxu1 %v3228_v0 }
 0xa80   :  { %2810 = vmatpush3.msra.mxu1 %v3900_v13 }
 0xa81   :  { %2811 = vmatprep.subr.mxu1 %v3228_v0 }
 0xa82   :  { %2812 = vmatpush3.msra.mxu1 %v3907_v15 }
 0xa83   :  { %2813 = vmatprep.subr.mxu1 %v3228_v0 }
 0xa84   :  { %2814 = vmatpush3.msra.mxu1 %v4021_v53 }
 0xa85   :  { %2815 = vmatprep.subr.mxu1 %v3228_v0 }
 0xa86   :  { %2816 = vmatpush3.msra.mxu1 %v4028_v54 }
 0xa87   :  { %2817 = vmatprep.subr.mxu1 %v3228_v0 }
 0xa88   :  { %2818 = vmatpush3.msra.mxu1 %v4035_v55 }
 0xa89   :  { %2819 = vmatprep.subr.mxu1 %v3228_v0 }
 0xa8a   :  { %2820 = vmatpush3.msra.mxu1 %v4042_v56 }
 0xa8b   :  { %2821 = vmatprep.subr.mxu1 %v3228_v0 }
 0xa8c   :  { %2822 = vmatpush3.msra.mxu1 %v4049_v57 }
 0xa8d   :  { %2823 = vmatprep.subr.mxu1 %v3228_v0 }
 0xa8e   :  { %2824 = vmatpush3.msra.mxu1 %v4056_v58 }
 0xa8f   :  { %2825 = vmatprep.subr.mxu1 %v3228_v0 }
 0xa90   :  { %2826 = vmatpush3.msra.mxu1 %v4063_v59 }
 0xa91   :  { %2827 = vmatprep.subr.mxu1 %v3228_v0 }
 0xa92   :  { %2828 = vmatpush3.msra.mxu1 %v4070_v60 }
 0xa93   :  { %2829 = vmatprep.subr.mxu1 %v3228_v0 }
 0xa94   :  { %2830 = vmatpush3.msra.mxu1 %v4077_v61 }
 0xa95   :  { %2831 = vmatprep.subr.mxu1 %v3228_v0 }
 0xa96   :  { %2832 = vmatpush3.msra.mxu1 %v4084_v62 }
 0xa97   :  { %2833 = vmatprep.subr.mxu1 %v3228_v0 }
 0xa98   :  { %2834 = vmatpush3.msra.mxu1 %v4091_v63 }
 0xa99   :  { %2873 = vmatprep.subr.mxu1 %v3228_v0 }
 0xb39   :  { %v1092_v30 = vpop.f32.mrf.mxu1 }
 0xb3a   :  { %v1093_v34 = vadd.f32 %v3531_v39, %v1092_v30  ;;  %v1860_v39 = vld [vmem:[%s4409_s0 + $0x38] sm:$0xff] }
 0xb3b   :  { %v2767_v35 = vpop.f32.mrf.mxu1 }
 0xb3c   :  { %3136 = vtanh.f32 %v1093_v34 }
 0xb49   :  { %v3137_v36 = vpop.eup %3136 }
 0xb4a   :  { %2801 = vmatmul.mubr.f32.vlgmr.msra.gmra.mxu0 %v3137_v36 }
 0xb4b   :  { %2839 = vmatpush3.msra.mxu0 %v3934_v19  ;;  %2870 = vmatprep.mubr.msk.f32.mxu0 %vm3229_vm0, %v3228_v0 }
 0xb4c   :  { %2840 = vmatprep.subr.mxu0 %v3228_v0 }
 0xb4d   :  { %2841 = vmatpush3.msra.mxu0 %v3940_v20 }
 0xb4e   :  { %2842 = vmatprep.subr.mxu0 %v3228_v0 }
 0xb4f   :  { %2843 = vmatpush3.msra.mxu0 %v3944_v21 }
 0xb50   :  { %2844 = vmatprep.subr.mxu0 %v3228_v0 }
 0xb51   :  { %2845 = vmatpush3.msra.mxu0 %v3948_v22 }
 0xb52   :  { %2846 = vmatprep.subr.mxu0 %v3228_v0 }
 0xb53   :  { %2847 = vmatpush3.msra.mxu0 %v3952_v23 }
 0xb54   :  { %2848 = vmatprep.subr.mxu0 %v3228_v0 }
 0xb55   :  { %2849 = vmatpush3.msra.mxu0 %v3956_v24 }
 0xb56   :  { %2850 = vmatprep.subr.mxu0 %v3228_v0 }
 0xb57   :  { %2851 = vmatpush3.msra.mxu0 %v3960_v25 }
 0xb58   :  { %2852 = vmatprep.subr.mxu0 %v3228_v0 }
 0xb59   :  { %2853 = vmatpush3.msra.mxu0 %v3964_v26 }
 0xb5a   :  { %2854 = vmatprep.subr.mxu0 %v3228_v0 }
 0xb5b   :  { %2855 = vmatpush3.msra.mxu0 %v3968_v27 }
 0xb5c   :  { %2856 = vmatprep.subr.mxu0 %v3228_v0 }
 0xb5d   :  { %2857 = vmatpush3.msra.mxu0 %v3972_v28 }
 0xb5e   :  { %2858 = vmatprep.subr.mxu0 %v3228_v0 }
 0xb5f   :  { %2859 = vmatpush3.msra.mxu0 %v3976_v29 }
 0xb60   :  { %2860 = vmatprep.subr.mxu0 %v3228_v0 }
 0xb61   :  { %2861 = vmatpush3.msra.mxu0 %v3980_v31 }
 0xb62   :  { %2862 = vmatprep.subr.mxu0 %v3228_v0 }
 0xb63   :  { %2863 = vmatpush3.msra.mxu0 %v3984_v32 }
 0xb64   :  { %2864 = vmatprep.subr.mxu0 %v3228_v0 }
 0xb65   :  { %2865 = vmatpush3.msra.mxu0 %v3988_v33 }
 0xb66   :  { %2866 = vmatprep.subr.mxu0 %v3228_v0 }
 0xb67   :  { %2867 = vmatpush3.msra.mxu0 %v3992_v46 }
 0xb68   :  { %2868 = vmatprep.subr.mxu0 %v3228_v0 }
 0xb69   :  { %2869 = vmatpush3.msra.mxu0 %v3996_v47 }
 0xb6a   :  { %2908 = vmatprep.subr.mxu0 %v3228_v0 }
 0xc0a   :  { %v1165_v37 = vpop.f32.mrf.mxu0 }
 0xc0b   :  { %v1166_v38 = vadd.f32 %v1860_v39, %v1165_v37 }
 0xc0c   :  { %v2802_v40 = vpop.f32.mrf.mxu0 }
 0xc0d   :  { %v1169_v41 = vmax.f32 %v1166_v38, 0.0 }
 0xc0f   :  { %1861 = vst [vmem:[%s4414_s5 + $0x38] sm:$0xff] %v1169_v41  ;;  %2836 = vmatmul.mubr.f32.vlgmr.msra.gmra.mxu1 %v1169_v41 }
 0xc10   :  { %2874 = vmatpush3.msra.mxu1 %v3877_v9  ;;  %2905 = vmatprep.mubr.msk.f32.mxu1 %vm3229_vm0, %v3228_v0 }
 0xc11   :  { %2875 = vmatprep.subr.mxu1 %v3228_v0 }
 0xc12   :  { %2876 = vmatpush3.msra.mxu1 %v3886_v11 }
 0xc13   :  { %2877 = vmatprep.subr.mxu1 %v3228_v0 }
 0xc14   :  { %2878 = vmatpush3.msra.mxu1 %v3893_v12 }
 0xc15   :  { %2879 = vmatprep.subr.mxu1 %v3228_v0 }
 0xc16   :  { %2880 = vmatpush3.msra.mxu1 %v3900_v13 }
 0xc17   :  { %2881 = vmatprep.subr.mxu1 %v3228_v0 }
 0xc18   :  { %2882 = vmatpush3.msra.mxu1 %v3907_v15 }
 0xc19   :  { %2883 = vmatprep.subr.mxu1 %v3228_v0 }
 0xc1a   :  { %2884 = vmatpush3.msra.mxu1 %v4021_v53 }
 0xc1b   :  { %2885 = vmatprep.subr.mxu1 %v3228_v0 }
 0xc1c   :  { %2886 = vmatpush3.msra.mxu1 %v4028_v54 }
 0xc1d   :  { %2887 = vmatprep.subr.mxu1 %v3228_v0 }
 0xc1e   :  { %2888 = vmatpush3.msra.mxu1 %v4035_v55 }
 0xc1f   :  { %2889 = vmatprep.subr.mxu1 %v3228_v0 }
 0xc20   :  { %2890 = vmatpush3.msra.mxu1 %v4042_v56 }
 0xc21   :  { %2891 = vmatprep.subr.mxu1 %v3228_v0 }
 0xc22   :  { %2892 = vmatpush3.msra.mxu1 %v4049_v57 }
 0xc23   :  { %2893 = vmatprep.subr.mxu1 %v3228_v0 }
 0xc24   :  { %2894 = vmatpush3.msra.mxu1 %v4056_v58 }
 0xc25   :  { %2895 = vmatprep.subr.mxu1 %v3228_v0 }
 0xc26   :  { %2896 = vmatpush3.msra.mxu1 %v4063_v59 }
 0xc27   :  { %2897 = vmatprep.subr.mxu1 %v3228_v0 }
 0xc28   :  { %2898 = vmatpush3.msra.mxu1 %v4070_v60 }
 0xc29   :  { %2899 = vmatprep.subr.mxu1 %v3228_v0 }
 0xc2a   :  { %2900 = vmatpush3.msra.mxu1 %v4077_v61 }
 0xc2b   :  { %2901 = vmatprep.subr.mxu1 %v3228_v0 }
 0xc2c   :  { %2902 = vmatpush3.msra.mxu1 %v4084_v62 }
 0xc2d   :  { %2903 = vmatprep.subr.mxu1 %v3228_v0 }
 0xc2e   :  { %2904 = vmatpush3.msra.mxu1 %v4091_v63 }
 0xc2f   :  { %2943 = vmatprep.subr.mxu1 %v3228_v0 }
 0xccf   :  { %v1238_v42 = vpop.f32.mrf.mxu1 }
 0xcd0   :  { %v1239_v44 = vadd.f32 %v4173_v43, %v1238_v42 }
 0xcd1   :  { %v2837_v45 = vpop.f32.mrf.mxu1 }
 0xcd2   :  { %3138 = vtanh.f32 %v1239_v44 }
 0xcdf   :  { %v3139_v5 = vpop.eup %3138 }
 0xce0   :  { %2871 = vmatmul.mubr.f32.vlgmr.msra.gmra.mxu0 %v3139_v5 }
 0xce1   :  { %2909 = vmatpush3.msra.mxu0 %v3934_v19  ;;  %2940 = vmatprep.mubr.msk.f32.mxu0 %vm3229_vm0, %v3228_v0 }
 0xce2   :  { %2910 = vmatprep.subr.mxu0 %v3228_v0 }
 0xce3   :  { %2911 = vmatpush3.msra.mxu0 %v3940_v20 }
 0xce4   :  { %2912 = vmatprep.subr.mxu0 %v3228_v0 }
 0xce5   :  { %2913 = vmatpush3.msra.mxu0 %v3944_v21 }
 0xce6   :  { %2914 = vmatprep.subr.mxu0 %v3228_v0 }
 0xce7   :  { %2915 = vmatpush3.msra.mxu0 %v3948_v22 }
 0xce8   :  { %2916 = vmatprep.subr.mxu0 %v3228_v0 }
 0xce9   :  { %2917 = vmatpush3.msra.mxu0 %v3952_v23 }
 0xcea   :  { %2918 = vmatprep.subr.mxu0 %v3228_v0 }
 0xceb   :  { %2919 = vmatpush3.msra.mxu0 %v3956_v24 }
 0xcec   :  { %2920 = vmatprep.subr.mxu0 %v3228_v0 }
 0xced   :  { %2921 = vmatpush3.msra.mxu0 %v3960_v25 }
 0xcee   :  { %2922 = vmatprep.subr.mxu0 %v3228_v0 }
 0xcef   :  { %2923 = vmatpush3.msra.mxu0 %v3964_v26 }
 0xcf0   :  { %2924 = vmatprep.subr.mxu0 %v3228_v0 }
 0xcf1   :  { %2925 = vmatpush3.msra.mxu0 %v3968_v27 }
 0xcf2   :  { %2926 = vmatprep.subr.mxu0 %v3228_v0 }
 0xcf3   :  { %2927 = vmatpush3.msra.mxu0 %v3972_v28 }
 0xcf4   :  { %2928 = vmatprep.subr.mxu0 %v3228_v0 }
 0xcf5   :  { %2929 = vmatpush3.msra.mxu0 %v3976_v29 }
 0xcf6   :  { %2930 = vmatprep.subr.mxu0 %v3228_v0 }
 0xcf7   :  { %2931 = vmatpush3.msra.mxu0 %v3980_v31 }
 0xcf8   :  { %2932 = vmatprep.subr.mxu0 %v3228_v0 }
 0xcf9   :  { %2933 = vmatpush3.msra.mxu0 %v3984_v32 }
 0xcfa   :  { %2934 = vmatprep.subr.mxu0 %v3228_v0 }
 0xcfb   :  { %2935 = vmatpush3.msra.mxu0 %v3988_v33 }
 0xcfc   :  { %2936 = vmatprep.subr.mxu0 %v3228_v0 }
 0xcfd   :  { %2937 = vmatpush3.msra.mxu0 %v3992_v46 }
 0xcfe   :  { %2938 = vmatprep.subr.mxu0 %v3228_v0 }
 0xcff   :  { %2939 = vmatpush3.msra.mxu0 %v3996_v47 }
 0xd00   :  { %2978 = vmatprep.subr.mxu0 %v3228_v0 }
 0xda0   :  { %v1311_v8 = vpop.f32.mrf.mxu0 }
 0xda1   :  { %v1312_v10 = vadd.f32 %v1862_v7, %v1311_v8 }
 0xda2   :  { %v2872_v1 = vpop.f32.mrf.mxu0 }
 0xda3   :  { %v1315_v2 = vmax.f32 %v1312_v10, 0.0 }
 0xda5   :  { %1863 = vst [vmem:[%s4414_s5 + $0x40] sm:$0xff] %v1315_v2  ;;  %2906 = vmatmul.mubr.f32.vlgmr.msra.gmra.mxu1 %v1315_v2 }
 0xda6   :  { %2944 = vmatpush3.msra.mxu1 %v3877_v9  ;;  %2975 = vmatprep.mubr.msk.f32.mxu1 %vm3229_vm0, %v3228_v0 }
 0xda7   :  { %2945 = vmatprep.subr.mxu1 %v3228_v0 }
 0xda8   :  { %2946 = vmatpush3.msra.mxu1 %v3886_v11 }
 0xda9   :  { %2947 = vmatprep.subr.mxu1 %v3228_v0 }
 0xdaa   :  { %2948 = vmatpush3.msra.mxu1 %v3893_v12 }
 0xdab   :  { %2949 = vmatprep.subr.mxu1 %v3228_v0 }
 0xdac   :  { %2950 = vmatpush3.msra.mxu1 %v3900_v13 }
 0xdad   :  { %2951 = vmatprep.subr.mxu1 %v3228_v0 }
 0xdae   :  { %2952 = vmatpush3.msra.mxu1 %v3907_v15 }
 0xdaf   :  { %2953 = vmatprep.subr.mxu1 %v3228_v0 }
 0xdb0   :  { %2954 = vmatpush3.msra.mxu1 %v4021_v53 }
 0xdb1   :  { %2955 = vmatprep.subr.mxu1 %v3228_v0 }
 0xdb2   :  { %2956 = vmatpush3.msra.mxu1 %v4028_v54 }
 0xdb3   :  { %2957 = vmatprep.subr.mxu1 %v3228_v0 }
 0xdb4   :  { %2958 = vmatpush3.msra.mxu1 %v4035_v55 }
 0xdb5   :  { %2959 = vmatprep.subr.mxu1 %v3228_v0 }
 0xdb6   :  { %2960 = vmatpush3.msra.mxu1 %v4042_v56 }
 0xdb7   :  { %2961 = vmatprep.subr.mxu1 %v3228_v0 }
 0xdb8   :  { %2962 = vmatpush3.msra.mxu1 %v4049_v57 }
 0xdb9   :  { %2963 = vmatprep.subr.mxu1 %v3228_v0 }
 0xdba   :  { %2964 = vmatpush3.msra.mxu1 %v4056_v58 }
 0xdbb   :  { %2965 = vmatprep.subr.mxu1 %v3228_v0 }
 0xdbc   :  { %2966 = vmatpush3.msra.mxu1 %v4063_v59 }
 0xdbd   :  { %2967 = vmatprep.subr.mxu1 %v3228_v0 }
 0xdbe   :  { %2968 = vmatpush3.msra.mxu1 %v4070_v60 }
 0xdbf   :  { %2969 = vmatprep.subr.mxu1 %v3228_v0 }
 0xdc0   :  { %2970 = vmatpush3.msra.mxu1 %v4077_v61 }
 0xdc1   :  { %2971 = vmatprep.subr.mxu1 %v3228_v0 }
 0xdc2   :  { %2972 = vmatpush3.msra.mxu1 %v4084_v62 }
 0xdc3   :  { %2973 = vmatprep.subr.mxu1 %v3228_v0 }
 0xdc4   :  { %2974 = vmatpush3.msra.mxu1 %v4091_v63 }
 0xdc5   :  { %3013 = vmatprep.subr.mxu1 %v3228_v0 }
 0xe65   :  { %v1384_v3 = vpop.f32.mrf.mxu1 }
 0xe66   :  { %v1385_v4 = vadd.f32 %v4173_v43, %v1384_v3 }
 0xe67   :  { %v2907_v6 = vpop.f32.mrf.mxu1 }
 0xe68   :  { %3140 = vtanh.f32 %v1385_v4 }
 0xe75   :  { %v3141_v14 = vpop.eup %3140 }
 0xe76   :  { %2941 = vmatmul.mubr.f32.vlgmr.msra.gmra.mxu0 %v3141_v14 }
 0xe77   :  { %2979 = vmatpush3.msra.mxu0 %v3934_v19  ;;  %3010 = vmatprep.mubr.msk.f32.mxu0 %vm3229_vm0, %v3228_v0 }
 0xe78   :  { %2980 = vmatprep.subr.mxu0 %v3228_v0 }
 0xe79   :  { %2981 = vmatpush3.msra.mxu0 %v3940_v20 }
 0xe7a   :  { %2982 = vmatprep.subr.mxu0 %v3228_v0 }
 0xe7b   :  { %2983 = vmatpush3.msra.mxu0 %v3944_v21 }
 0xe7c   :  { %2984 = vmatprep.subr.mxu0 %v3228_v0 }
 0xe7d   :  { %2985 = vmatpush3.msra.mxu0 %v3948_v22 }
 0xe7e   :  { %2986 = vmatprep.subr.mxu0 %v3228_v0 }
 0xe7f   :  { %2987 = vmatpush3.msra.mxu0 %v3952_v23 }
 0xe80   :  { %2988 = vmatprep.subr.mxu0 %v3228_v0 }
 0xe81   :  { %2989 = vmatpush3.msra.mxu0 %v3956_v24 }
 0xe82   :  { %2990 = vmatprep.subr.mxu0 %v3228_v0 }
 0xe83   :  { %2991 = vmatpush3.msra.mxu0 %v3960_v25 }
 0xe84   :  { %2992 = vmatprep.subr.mxu0 %v3228_v0 }
 0xe85   :  { %2993 = vmatpush3.msra.mxu0 %v3964_v26 }
 0xe86   :  { %2994 = vmatprep.subr.mxu0 %v3228_v0 }
 0xe87   :  { %2995 = vmatpush3.msra.mxu0 %v3968_v27 }
 0xe88   :  { %2996 = vmatprep.subr.mxu0 %v3228_v0 }
 0xe89   :  { %2997 = vmatpush3.msra.mxu0 %v3972_v28 }
 0xe8a   :  { %2998 = vmatprep.subr.mxu0 %v3228_v0 }
 0xe8b   :  { %2999 = vmatpush3.msra.mxu0 %v3976_v29 }
 0xe8c   :  { %3000 = vmatprep.subr.mxu0 %v3228_v0 }
 0xe8d   :  { %3001 = vmatpush3.msra.mxu0 %v3980_v31 }
 0xe8e   :  { %3002 = vmatprep.subr.mxu0 %v3228_v0 }
 0xe8f   :  { %3003 = vmatpush3.msra.mxu0 %v3984_v32 }
 0xe90   :  { %3004 = vmatprep.subr.mxu0 %v3228_v0 }
 0xe91   :  { %3005 = vmatpush3.msra.mxu0 %v3988_v33 }
 0xe92   :  { %3006 = vmatprep.subr.mxu0 %v3228_v0 }
 0xe93   :  { %3007 = vmatpush3.msra.mxu0 %v3992_v46 }
 0xe94   :  { %3008 = vmatprep.subr.mxu0 %v3228_v0 }
 0xe95   :  { %3009 = vmatpush3.msra.mxu0 %v3996_v47 }
 0xe96   :  { %3048 = vmatprep.subr.mxu0 %v3228_v0 }
 0xf36   :  { %v1457_v17 = vpop.f32.mrf.mxu0 }
 0xf37   :  { %v1458_v18 = vadd.f32 %v1864_v16, %v1457_v17 }
 0xf38   :  { %v2942_v48 = vpop.f32.mrf.mxu0 }
 0xf39   :  { %v1461_v49 = vmax.f32 %v1458_v18, 0.0 }
 0xf3b   :  { %1865 = vst [vmem:[%s4414_s5 + $0x48] sm:$0xff] %v1461_v49  ;;  %2976 = vmatmul.mubr.f32.vlgmr.msra.gmra.mxu1 %v1461_v49 }
 0xf3c   :  { %3014 = vmatpush3.msra.mxu1 %v3877_v9  ;;  %3045 = vmatprep.mubr.msk.f32.mxu1 %vm3229_vm0, %v3228_v0 }
 0xf3d   :  { %3015 = vmatprep.subr.mxu1 %v3228_v0 }
 0xf3e   :  { %3016 = vmatpush3.msra.mxu1 %v3886_v11 }
 0xf3f   :  { %3017 = vmatprep.subr.mxu1 %v3228_v0 }
 0xf40   :  { %3018 = vmatpush3.msra.mxu1 %v3893_v12 }
 0xf41   :  { %3019 = vmatprep.subr.mxu1 %v3228_v0 }
 0xf42   :  { %3020 = vmatpush3.msra.mxu1 %v3900_v13 }
 0xf43   :  { %3021 = vmatprep.subr.mxu1 %v3228_v0 }
 0xf44   :  { %3022 = vmatpush3.msra.mxu1 %v3907_v15 }
 0xf45   :  { %3023 = vmatprep.subr.mxu1 %v3228_v0 }
 0xf46   :  { %3024 = vmatpush3.msra.mxu1 %v4021_v53 }
 0xf47   :  { %3025 = vmatprep.subr.mxu1 %v3228_v0 }
 0xf48   :  { %3026 = vmatpush3.msra.mxu1 %v4028_v54 }
 0xf49   :  { %3027 = vmatprep.subr.mxu1 %v3228_v0 }
 0xf4a   :  { %3028 = vmatpush3.msra.mxu1 %v4035_v55 }
 0xf4b   :  { %3029 = vmatprep.subr.mxu1 %v3228_v0 }
 0xf4c   :  { %3030 = vmatpush3.msra.mxu1 %v4042_v56 }
 0xf4d   :  { %3031 = vmatprep.subr.mxu1 %v3228_v0 }
 0xf4e   :  { %3032 = vmatpush3.msra.mxu1 %v4049_v57 }
 0xf4f   :  { %3033 = vmatprep.subr.mxu1 %v3228_v0 }
 0xf50   :  { %3034 = vmatpush3.msra.mxu1 %v4056_v58 }
 0xf51   :  { %3035 = vmatprep.subr.mxu1 %v3228_v0 }
 0xf52   :  { %3036 = vmatpush3.msra.mxu1 %v4063_v59 }
 0xf53   :  { %3037 = vmatprep.subr.mxu1 %v3228_v0 }
 0xf54   :  { %3038 = vmatpush3.msra.mxu1 %v4070_v60 }
 0xf55   :  { %3039 = vmatprep.subr.mxu1 %v3228_v0 }
 0xf56   :  { %3040 = vmatpush3.msra.mxu1 %v4077_v61 }
 0xf57   :  { %3041 = vmatprep.subr.mxu1 %v3228_v0 }
 0xf58   :  { %3042 = vmatpush3.msra.mxu1 %v4084_v62 }
 0xf59   :  { %3043 = vmatprep.subr.mxu1 %v3228_v0 }
 0xf5a   :  { %3044 = vmatpush3.msra.mxu1 %v4091_v63 }
 0xf5b   :  { %3083 = vmatprep.subr.mxu1 %v3228_v0 }
 0xffb   :  { %v1530_v50 = vpop.f32.mrf.mxu1 }
 0xffc   :  { %v1531_v51 = vadd.f32 %v4173_v43, %v1530_v50 }
 0xffd   :  { %v2977_v52 = vpop.f32.mrf.mxu1 }
 0xffe   :  { %3142 = vtanh.f32 %v1531_v51 }
0x100b   :  { %v3143_v30 = vpop.eup %3142 }
0x100c   :  { %3011 = vmatmul.mubr.f32.vlgmr.msra.gmra.mxu0 %v3143_v30 }
0x100d   :  { %3049 = vmatpush3.msra.mxu0 %v3934_v19  ;;  %3080 = vmatprep.mubr.msk.f32.mxu0 %vm3229_vm0, %v3228_v0  ;;  %v1866_v19 = vld [vmem:[%s4409_s0 + $0x50] sm:$0xff] }
0x100e   :  { %3050 = vmatprep.subr.mxu0 %v3228_v0 }
0x100f   :  { %3051 = vmatpush3.msra.mxu0 %v3940_v20 }
0x1010   :  { %3052 = vmatprep.subr.mxu0 %v3228_v0 }
0x1011   :  { %3053 = vmatpush3.msra.mxu0 %v3944_v21 }
0x1012   :  { %3054 = vmatprep.subr.mxu0 %v3228_v0 }
0x1013   :  { %3055 = vmatpush3.msra.mxu0 %v3948_v22 }
0x1014   :  { %3056 = vmatprep.subr.mxu0 %v3228_v0 }
0x1015   :  { %3057 = vmatpush3.msra.mxu0 %v3952_v23 }
0x1016   :  { %3058 = vmatprep.subr.mxu0 %v3228_v0 }
0x1017   :  { %3059 = vmatpush3.msra.mxu0 %v3956_v24 }
0x1018   :  { %3060 = vmatprep.subr.mxu0 %v3228_v0 }
0x1019   :  { %3061 = vmatpush3.msra.mxu0 %v3960_v25 }
0x101a   :  { %3062 = vmatprep.subr.mxu0 %v3228_v0 }
0x101b   :  { %3063 = vmatpush3.msra.mxu0 %v3964_v26 }
0x101c   :  { %3064 = vmatprep.subr.mxu0 %v3228_v0 }
0x101d   :  { %3065 = vmatpush3.msra.mxu0 %v3968_v27 }
0x101e   :  { %3066 = vmatprep.subr.mxu0 %v3228_v0 }
0x101f   :  { %3067 = vmatpush3.msra.mxu0 %v3972_v28 }
0x1020   :  { %3068 = vmatprep.subr.mxu0 %v3228_v0 }
0x1021   :  { %3069 = vmatpush3.msra.mxu0 %v3976_v29 }
0x1022   :  { %3070 = vmatprep.subr.mxu0 %v3228_v0 }
0x1023   :  { %3071 = vmatpush3.msra.mxu0 %v3980_v31 }
0x1024   :  { %3072 = vmatprep.subr.mxu0 %v3228_v0 }
0x1025   :  { %3073 = vmatpush3.msra.mxu0 %v3984_v32 }
0x1026   :  { %3074 = vmatprep.subr.mxu0 %v3228_v0 }
0x1027   :  { %3075 = vmatpush3.msra.mxu0 %v3988_v33 }
0x1028   :  { %3076 = vmatprep.subr.mxu0 %v3228_v0 }
0x1029   :  { %3077 = vmatpush3.msra.mxu0 %v3992_v46 }
0x102a   :  { %3078 = vmatprep.subr.mxu0 %v3228_v0 }
0x102b   :  { %3079 = vmatpush3.msra.mxu0 %v3996_v47 }
0x10cc   :  { %v1603_v20 = vpop.f32.mrf.mxu0 }
0x10cd   :  { %v1604_v21 = vadd.f32 %v1866_v19, %v1603_v20 }
0x10ce   :  { %v3012_v22 = vpop.f32.mrf.mxu0 }
0x10cf   :  { %v1607_v23 = vmax.f32 %v1604_v21, 0.0 }
0x10d1   :  { %1867 = vst [vmem:[%s4414_s5 + $0x50] sm:$0xff] %v1607_v23  ;;  %3046 = vmatmul.mubr.f32.vlgmr.msra.gmra.mxu1 %v1607_v23 }
0x10d2   :  { %3084 = vmatpush3.msra.mxu1 %v3877_v9  ;;  %3115 = vmatprep.mubr.msk.f32.mxu1 %vm3229_vm0, %v3228_v0 }
0x10d3   :  { %3085 = vmatprep.subr.mxu1 %v3228_v0 }
0x10d4   :  { %3086 = vmatpush3.msra.mxu1 %v3886_v11 }
0x10d5   :  { %3087 = vmatprep.subr.mxu1 %v3228_v0 }
0x10d6   :  { %3088 = vmatpush3.msra.mxu1 %v3893_v12 }
0x10d7   :  { %3089 = vmatprep.subr.mxu1 %v3228_v0 }
0x10d8   :  { %3090 = vmatpush3.msra.mxu1 %v3900_v13 }
0x10d9   :  { %3091 = vmatprep.subr.mxu1 %v3228_v0 }
0x10da   :  { %3092 = vmatpush3.msra.mxu1 %v3907_v15  ;;  %v1868_v15 = vld [vmem:[%s4409_s0 + $0x58] sm:$0xff]  ;;  %s3201_s0 = scalar_lea.vmem %s1837_s16, 128 }
0x10db   :  { %3093 = vmatprep.subr.mxu1 %v3228_v0  ;;  %p3202_p5 = scmp.ne.s32.totalorder %s1837_s16, %s3201_s0  ;;  %p3207_p7 = scmp.lt.s32.totalorder %s3201_s0, %s3201_s0 }
0x10dc   :  { %3094 = vmatpush3.msra.mxu1 %v4021_v53 }
0x10dd   :  { %3095 = vmatprep.subr.mxu1 %v3228_v0  ;;  %p3208_p8 = por %p3207_p7, %p3206_p6 }
0x10de   :  { %3096 = vmatpush3.msra.mxu1 %v4028_v54 }
0x10df   :  { %3097 = vmatprep.subr.mxu1 %v3228_v0  ;;  %p3209_p9 = pnand %p3208_p8, %p3202_p5 }
0x10e0   :  { %3098 = vmatpush3.msra.mxu1 %v4035_v55 }
0x10e1   :  { %3099 = vmatprep.subr.mxu1 %v3228_v0 }
0x10e2   :  { %3100 = vmatpush3.msra.mxu1 %v4042_v56 }
0x10e3   :  { %3101 = vmatprep.subr.mxu1 %v3228_v0 }
0x10e4   :  { %3102 = vmatpush3.msra.mxu1 %v4049_v57 }
0x10e5   :  { %3103 = vmatprep.subr.mxu1 %v3228_v0 }
0x10e6   :  { %3104 = vmatpush3.msra.mxu1 %v4056_v58 }
0x10e7   :  { %3105 = vmatprep.subr.mxu1 %v3228_v0 }
0x10e8   :  { %3106 = vmatpush3.msra.mxu1 %v4063_v59 }
0x10e9   :  { %3107 = vmatprep.subr.mxu1 %v3228_v0 }
0x10ea   :  { %3108 = vmatpush3.msra.mxu1 %v4070_v60 }
0x10eb   :  { %3109 = vmatprep.subr.mxu1 %v3228_v0 }
0x10ec   :  { %3110 = vmatpush3.msra.mxu1 %v4077_v61 }
0x10ed   :  { %3111 = vmatprep.subr.mxu1 %v3228_v0 }
0x10ee   :  { %3112 = vmatpush3.msra.mxu1 %v4084_v62 }
0x10ef   :  { %3113 = vmatprep.subr.mxu1 %v3228_v0 }
0x10f0   :  { %3114 = vmatpush3.msra.mxu1 %v4091_v63 }
0x1191   :  { %v1676_v9 = vpop.f32.mrf.mxu1 }
0x1192   :  { %v1677_v11 = vadd.f32 %v4173_v43, %v1676_v9 }
0x1193   :  { %v3047_v12 = vpop.f32.mrf.mxu1 }
0x1194   :  { %3144 = vtanh.f32 %v1677_v11 }
0x11a1   :  { %v3145_v13 = vpop.eup %3144 }
0x11a2   :  { %3081 = vmatmul.mubr.f32.vlgmr.msra.gmra.mxu0 %v3145_v13 }
0x1262   :  { %v1749_v24 = vpop.f32.mrf.mxu0 }
0x1263   :  { %v1750_v25 = vadd.f32 %v1868_v15, %v1749_v24 }
0x1264   :  { %v3082_v26 = vpop.f32.mrf.mxu0 }
0x1265   :  { %v1753_v27 = vmax.f32 %v1750_v25, 0.0 }
0x1267   :  { %1869 = vst [vmem:[%s4414_s5 + $0x58] sm:$0xff] %v1753_v27  ;;  %3116 = vmatmul.mubr.f32.vlgmr.msra.gmra.mxu1 %v1753_v27 }
0x1327   :  { %v1822_v0 = vpop.f32.mrf.mxu1 }
0x1328   :  { %v1823_v28 = vadd.f32 %v4173_v43, %v1822_v0 }
0x1329   :  { %v3117_v29 = vpop.f32.mrf.mxu1 }
0x132a   :  { %3146 = vtanh.f32 %v1823_v28 }
0x1337   :  { %v3147_v31 = vpop.eup %3146 }
0x1338   :  { %1827 = vst [vmem:[#allocation5] sm:$0xff] %v3147_v31 }
0x1339   :  { %3212 = shalt.err (!%p3209_p9)
}
0x133a   :  { %1839 = dma.vmem_to_hbm [thread:$0]  %s1837_s16, 128, %s4415_s6, [#allocation4]  }
0x133b   :  { %3223 = dma.done.wait [#allocation4], 128  }
0x133c   :  { %3224 = vsyncadd [#allocation4], 4294967168 }
0x133d   :  { %1845 = vsyncpa [#allocation3], 1 }
0x133e   :  { %1846 = vsyncpa [#allocation4], 1 }

</bundles_post_ra>
